<compile_context>
chip_gen: v7x
topology: tpu7x:2x2x1
jax: 0.10.0
libtpu: 0.0.40
codegen_flags: <defaults>
</compile_context>

<pallas_src>
import math
from functools import partial

import jax
import jax.numpy as jnp
from jax.experimental import pallas as pl
from jax.experimental.pallas import tpu as pltpu

_INV_SQRT2 = 1.0 / math.sqrt(2.0)
_BN_EPS = 1e-5
_VMEM_LIMIT = 32 * 1024 * 1024   # safe scoped-VMEM cap on v5e/v6e/v7x
_MAX_TILE_K = 2048               # single-K-step cap (2048x128 bf16 weight = 512 KiB)
_MAX_TILE_M = 256                # multi-tile M block (keeps >=2 blocks for v7x)
_BN_FUSE_MAX_M = 1024            # fuse BN+GELU into finalize when M_pad <= this


def _round_up(x, m):
    return (x + m - 1) // m * m


def _gelu(y):
    # exact erf-based GELU == torch.nn.GELU() default (approximate='none')
    return 0.5 * y * (1.0 + jax.lax.erf(y * _INV_SQRT2))


def _pad_k(K):
    """K padding / K tile choice.  Single K step whenever it fits _MAX_TILE_K."""
    k128 = _round_up(K, 128)
    if k128 <= _MAX_TILE_K:
        return k128, k128
    nk = -(-k128 // _MAX_TILE_K)
    tile_k = _round_up(-(-k128 // nk), 128)
    return tile_k * nk, tile_k


def _pick_tile_m(M):
    """M tiling for the non-fused path: >=2 parallel blocks once M is large."""
    m8 = _round_up(M, 8)
    if m8 <= _MAX_TILE_M:
        return m8, m8
    return _round_up(m8, _MAX_TILE_M), _MAX_TILE_M


# ----------------------------- Pallas kernels ------------------------------ #

def _mm_kernel(p_ref, w_ref, b_ref, o32_ref, obf_ref, *acc,
               epilogue, add_bias, m_true):
    """im2col-slab @ weight matmul with fused epilogue.

    epilogue: "none" | "gelu" | "bn_gelu" (training-mode BatchNorm folded in;
    requires the whole M in this tile, padded rows exactly zero, no bias).
    Emits an f32 feature slab and a bf16 slab for the next layer."""

    def finalize(y):
        if add_bias:
            y = y + b_ref[...]
        if epilogue == "bn_gelu":
            inv_m = 1.0 / m_true          # divide by the TRUE row count
            mean = jnp.sum(y, axis=0, keepdims=True) * inv_m
            var = jnp.maximum(
                jnp.sum(y * y, axis=0, keepdims=True) * inv_m - mean * mean, 0.0)
            y = _gelu((y - mean) * jax.lax.rsqrt(var + _BN_EPS))
        elif epilogue == "gelu":
            y = _gelu(y)
        o32_ref[...] = y
        obf_ref[...] = y.astype(jnp.bfloat16)

    if not acc:
        # Single K step: no VMEM accumulator, no init/finalize gating.
        finalize(jnp.dot(p_ref[...], w_ref[...],
                         preferred_element_type=jnp.float32))
    else:
        (acc_ref,) = acc
        k = pl.program_id(1)

        @pl.when(k == 0)
        def _():
            acc_ref[...] = jnp.zeros_like(acc_ref)

        acc_ref[...] += jnp.dot(p_ref[...], w_ref[...],
                                preferred_element_type=jnp.float32)

        @pl.when(k == pl.num_programs(1) - 1)
        def _():
            finalize(acc_ref[...])


def _bn_gelu_kernel(x_ref, s_ref, t_ref, o32_ref, obf_ref):
    # Fallback (large-M) BatchNorm scale/shift + GELU.  Not used at demo sizes.
    y = _gelu(x_ref[...] * s_ref[...] + t_ref[...])
    o32_ref[...] = y
    obf_ref[...] = y.astype(jnp.bfloat16)


# ------------------------------ Pallas wrappers ----------------------------- #

def _pallas_conv_matmul(p, w_pad, b_pad, *, M_pad, tile_m, tile_k,
                        epilogue, add_bias, m_true):
    """(M,K) bf16 slab @ (K_pad,N_pad) bf16 weight -> (M_pad,N_pad) f32 + bf16."""
    M, K = p.shape
    K_pad, N_pad = w_pad.shape
    grid_m = M_pad // tile_m
    grid_k = K_pad // tile_k
    if epilogue == "bn_gelu":
        assert grid_m == 1, "fused BN requires a single M tile"

    p_p = jnp.pad(p, ((0, M_pad - M), (0, K_pad - K)))
    scratch = [] if grid_k == 1 else [pltpu.VMEM((tile_m, N_pad), jnp.float32)]

    return pl.pallas_call(
        partial(_mm_kernel, epilogue=epilogue, add_bias=add_bias, m_true=m_true),
        out_shape=(jax.ShapeDtypeStruct((M_pad, N_pad), jnp.float32),
                   jax.ShapeDtypeStruct((M_pad, N_pad), jnp.bfloat16)),
        grid_spec=pltpu.PrefetchScalarGridSpec(
            num_scalar_prefetch=0,
            grid=(grid_m, grid_k),
            in_specs=[pl.BlockSpec((tile_m, tile_k), lambda i, k: (i, k)),
                      pl.BlockSpec((tile_k, N_pad), lambda i, k: (k, 0)),
                      pl.BlockSpec((1, N_pad), lambda i, k: (0, 0))],
            out_specs=(pl.BlockSpec((tile_m, N_pad), lambda i, k: (i, 0)),
                       pl.BlockSpec((tile_m, N_pad), lambda i, k: (i, 0))),
            scratch_shapes=scratch),
        compiler_params=pltpu.CompilerParams(
            dimension_semantics=("parallel", "arbitrary"),
            vmem_limit_bytes=_VMEM_LIMIT),
    )(p_p, w_pad, b_pad)


def _pallas_bn_gelu(y32_pad, scale, shift, tile_m, grid_m, N_pad):
    """Fallback tiled scale/shift + GELU (only when BN layer has >1 M tile)."""
    M_pad = y32_pad.shape[0]
    return pl.pallas_call(
        _bn_gelu_kernel,
        out_shape=(jax.ShapeDtypeStruct((M_pad, N_pad), jnp.float32),
                   jax.ShapeDtypeStruct((M_pad, N_pad), jnp.bfloat16)),
        grid_spec=pltpu.PrefetchScalarGridSpec(
            num_scalar_prefetch=0,
            grid=(grid_m,),
            in_specs=[pl.BlockSpec((tile_m, N_pad), lambda i: (i, 0)),
                      pl.BlockSpec((1, N_pad), lambda i: (0, 0)),
                      pl.BlockSpec((1, N_pad), lambda i: (0, 0))],
            out_specs=(pl.BlockSpec((tile_m, N_pad), lambda i: (i, 0)),
                       pl.BlockSpec((tile_m, N_pad), lambda i: (i, 0)))),
        compiler_params=pltpu.CompilerParams(
            dimension_semantics=("parallel",),
            vmem_limit_bytes=_VMEM_LIMIT),
    )(y32_pad, scale.astype(jnp.float32), shift.astype(jnp.float32))


# ------------------------------- JAX glue ---------------------------------- #

def _im2col(x_nhwc, k, stride, pad):
    """NHWC -> (N*Ho*Wo, K*K*C) bf16 patch slab, ordering (kh, kw, cin)."""
    # TODO(synk): im2col is still materialized by XLA; fusing the patch build
    # into the Pallas kernel would remove one slab HBM round-trip per layer.
    x = jnp.pad(x_nhwc.astype(jnp.bfloat16),
                ((0, 0), (pad, pad), (pad, pad), (0, 0)))
    n, h, w, c = x.shape
    ho = (h - k) // stride + 1
    wo = (w - k) // stride + 1
    cols = []
    for kh in range(k):
        for kw in range(k):
            cols.append(x[:, kh:kh + stride * ho:stride,
                          kw:kw + stride * wo:stride, :])
    p = jnp.stack(cols, axis=3)                      # (n, ho, wo, k*k, c)
    return p.reshape(n * ho * wo, k * k * c), (n, ho, wo)


def _conv_block(x_nhwc, w_pad, b_pad, *, cout, stride, use_bn, use_gelu,
                add_bias):
    """One conv(+BN)(+GELU) layer.  Returns (f32 feature NHWC, bf16 act NHWC)."""
    K_pad, N_pad = w_pad.shape
    p, (n, ho, wo) = _im2col(x_nhwc, 4, stride, pad=1)
    M, K = p.shape
    k_pad_chk, tile_k = _pad_k(K)
    assert k_pad_chk == K_pad

    if use_bn and _round_up(M, 8) <= _BN_FUSE_MAX_M:
        # Fused path: whole M in one tile, BN stats + scale/shift + GELU in the
        # matmul finalize.  Correct because bias is absent on BN layers and
        # zero-padded rows/cols contribute exactly 0 to the in-kernel sums
        # while mean/var divide by the true M.
        tile_m = _round_up(M, 8)
        y32, ybf = _pallas_conv_matmul(
            p, w_pad, b_pad, M_pad=tile_m, tile_m=tile_m, tile_k=tile_k,
            epilogue="bn_gelu", add_bias=False, m_true=M)
    else:
        M_pad, tile_m = _pick_tile_m(M)
        epilogue = "none" if use_bn else ("gelu" if use_gelu else "none")
        y32, ybf = _pallas_conv_matmul(
            p, w_pad, b_pad, M_pad=M_pad, tile_m=tile_m, tile_k=tile_k,
            epilogue=epilogue, add_bias=add_bias and not use_bn, m_true=M)
        if use_bn:
            # Large-M fallback: batch stats in XLA, BN+GELU in a second kernel.
            yv = y32[:M, :]
            mean = jnp.mean(yv, axis=0, keepdims=True)
            var = jnp.maximum(jnp.mean(yv * yv, axis=0, keepdims=True)
                              - mean * mean, 0.0)
            scale = jax.lax.rsqrt(var + _BN_EPS)
            shift = -mean * scale
            y32, ybf = _pallas_bn_gelu(y32, scale, shift, tile_m,
                                       M_pad // tile_m, N_pad)

    feat = y32[:M, :cout].reshape(n, ho, wo, cout)   # f32, returned to caller
    act = ybf[:M, :cout].reshape(n, ho, wo, cout)    # bf16, feeds next layer
    return feat, act


def _spectral_normalize(w_oihw, key, n_iter=10, eps=1e-12):
    """Deterministic spectral normalization (power iteration) at setup,
    approximating nn.utils.spectral_norm: W / sigma, W viewed (Cout, rest)."""
    # TODO(synk): PyTorch updates persistent u/v with 1 power iteration per
    # forward; here sigma is fixed at setup (deterministic approximation).
    cout = w_oihw.shape[0]
    w2d = w_oihw.reshape(cout, -1)
    u = jax.random.normal(key, (cout,), jnp.float32)
    u = u / (jnp.linalg.norm(u) + eps)
    v = jnp.zeros((w2d.shape[1],), jnp.float32)
    for _ in range(n_iter):
        v = w2d.T @ u
        v = v / (jnp.linalg.norm(v) + eps)
        u = w2d @ v
        u = u / (jnp.linalg.norm(u) + eps)
    sigma = u @ (w2d @ v)
    return w_oihw / sigma


def _layer_specs(in_channels, features):
    # name, cin, cout, stride, use_bn, use_gelu, has_bias
    return [
        ("conv1", in_channels, features,      2, False, True,  True),
        ("conv2", features,     features * 2, 2, True,  True,  False),
        ("conv3", features * 2, features * 4, 2, True,  True,  False),
        ("conv4", features * 4, features * 8, 1, True,  True,  False),
        ("final", features * 8, 1,            1, False, False, True),
    ]


def init_params(key, in_channels=6, features=16):
    """Deterministic synthetic init matching the module's shapes; weights are
    pre-packed (transposed, bf16, padded to (K_pad, N_pad)) for the kernel."""
    params = {}
    for name, cin, cout, _stride, _bn, _gelu, has_bias in \
            _layer_specs(in_channels, features):
        key, wk, uk, bk = jax.random.split(key, 4)
        fan_in = cin * 16
        bound = 1.0 / math.sqrt(fan_in)
        w = jax.random.uniform(wk, (cout, cin, 4, 4), jnp.float32, -bound, bound)
        w = _spectral_normalize(w, uk)
        b = (jax.random.uniform(bk, (cout,), jnp.float32, -bound, bound)
             if has_bias else jnp.zeros((cout,), jnp.float32))
        # Pre-pack matmul operands once (hoisted out of the jitted forward).
        K = cin * 16
        K_pad, _ = _pad_k(K)
        N_pad = _round_up(cout, 128)
        w2d = jnp.transpose(w, (2, 3, 1, 0)).reshape(K, cout)   # (kh,kw,cin) order
        w_pad = jnp.pad(w2d, ((0, K_pad - K), (0, N_pad - cout))).astype(jnp.bfloat16)
        b_pad = jnp.pad(b, (0, N_pad - cout)).reshape(1, N_pad).astype(jnp.float32)
        params[name] = (w_pad, b_pad)
    return params


def make_patchgan_forward(in_channels=6, features=16):
    specs = _layer_specs(in_channels, features)

    @jax.jit
    def forward(params, x, y):
        """x, y: NCHW float32.  Returns (final NCHW, [x1, x2, x3, x4] NCHW)."""
        inp = jnp.concatenate([x, y], axis=1)           # cat along channels
        act = jnp.transpose(inp, (0, 2, 3, 1))          # NCHW -> NHWC
        feats = []
        for name, _cin, cout, stride, use_bn, use_gelu, has_bias in specs:
            w_pad, b_pad = params[name]
            feat, act = _conv_block(act, w_pad, b_pad, cout=cout, stride=stride,
                                    use_bn=use_bn, use_gelu=use_gelu,
                                    add_bias=has_bias)
            feats.append(feat)
        to_nchw = lambda a: jnp.transpose(a, (0, 3, 1, 2))
        return to_nchw(feats[-1]), [to_nchw(f) for f in feats[:-1]]

    return forward


# --------------------------------- main ------------------------------------ #

if __name__ == "__main__":
    key = jax.random.PRNGKey(0)
    pkey, xkey, ykey = jax.random.split(key, 3)

    in_channels, features = 6, 16                     # small `features` for speed
    n, h, w = 2, 32, 32                               # 32x32 keeps final conv valid

    params = init_params(pkey, in_channels=in_channels, features=features)
    forward = make_patchgan_forward(in_channels=in_channels, features=features)

    x = jax.random.normal(xkey, (n, in_channels // 2, h, w), jnp.float32)
    y = jax.random.normal(ykey, (n, in_channels // 2, h, w), jnp.float32)

    out, feats = forward(params, x, y)
    jax.block_until_ready(out)
    jax.block_until_ready(feats)

    expected = {
        "out": (n, 1, 2, 2),
        "x1": (n, features, 16, 16),
        "x2": (n, features * 2, 8, 8),
        "x3": (n, features * 4, 4, 4),
        "x4": (n, features * 8, 3, 3),
    }
    assert out.shape == expected["out"], out.shape
    for f, name in zip(feats, ["x1", "x2", "x3", "x4"]):
        assert f.shape == expected[name], (name, f.shape)
    assert all(bool(jnp.all(jnp.isfinite(f))) for f in feats + [out])

    print("KERNEL_OK")
</pallas_src>

<mosaic_0001>
module attributes {stable_mosaic.version = 11 : i64} {
  func.func @_mm_kernel(%arg0: i32, %arg1: i32, %arg2: memref<256x128xbf16, #tpu.memory_space<vmem>>, %arg3: memref<128x128xbf16, #tpu.memory_space<vmem>>, %arg4: memref<1x128xf32, #tpu.memory_space<vmem>>, %arg5: memref<256x128xf32, #tpu.memory_space<vmem>>, %arg6: memref<256x128xbf16, #tpu.memory_space<vmem>>) attributes {dimension_semantics = [#tpu.dimension_semantics<parallel>, #tpu.dimension_semantics<arbitrary>], iteration_bounds = array<i64: 2, 1>, scalar_prefetch = 0 : i64, scratch_operands = 0 : i64, tpu.core_type = #tpu.core_type<tc>, window_params = [{transform_indices = @transform_0, window_bounds = array<i64: 256, 128>}, {transform_indices = @transform_1, window_bounds = array<i64: 128, 128>}, {pipeline_mode = #tpu.pipeline_mode<synchronous>, transform_indices = @transform_2, window_bounds = array<i64: 1, 128>}, {transform_indices = @transform_3, window_bounds = array<i64: 256, 128>}, {transform_indices = @transform_4, window_bounds = array<i64: 256, 128>}]} {
    %c0 = arith.constant 0 : index
    %c0_0 = arith.constant 0 : index
    %0 = vector.load %arg2[%c0, %c0_0] : memref<256x128xbf16, #tpu.memory_space<vmem>>, vector<256x128xbf16>
    %c0_1 = arith.constant 0 : index
    %c0_2 = arith.constant 0 : index
    %1 = vector.load %arg3[%c0_1, %c0_2] : memref<128x128xbf16, #tpu.memory_space<vmem>>, vector<128x128xbf16>
    %cst = arith.constant dense<0.000000e+00> : vector<256x128xf32>
    %2 = tpu.matmul %0, %1, %cst {dimension_numbers = #tpu.dot_dimension_numbers<[1], [0], [0], [1], [0, 0, 1, 1], [], []>} : vector<256x128xbf16>, vector<128x128xbf16>, vector<256x128xf32> -> vector<256x128xf32>
    %c0_3 = arith.constant 0 : index
    %c0_4 = arith.constant 0 : index
    %3 = vector.load %arg4[%c0_3, %c0_4] : memref<1x128xf32, #tpu.memory_space<vmem>>, vector<1x128xf32>
    %4 = vector.broadcast %3 : vector<1x128xf32> to vector<256x128xf32>
    %5 = arith.addf %2, %4 : vector<256x128xf32>
    %cst_5 = arith.constant 5.000000e-01 : f32
    %6 = vector.broadcast %cst_5 : f32 to vector<256x128xf32>
    %7 = arith.mulf %6, %5 : vector<256x128xf32>
    %cst_6 = arith.constant 0.707106769 : f32
    %8 = vector.broadcast %cst_6 : f32 to vector<256x128xf32>
    %9 = arith.mulf %5, %8 : vector<256x128xf32>
    %10 = math.erf %9 : vector<256x128xf32>
    %cst_7 = arith.constant 1.000000e+00 : f32
    %11 = vector.broadcast %cst_7 : f32 to vector<256x128xf32>
    %12 = arith.addf %11, %10 : vector<256x128xf32>
    %13 = arith.mulf %7, %12 : vector<256x128xf32>
    %c0_8 = arith.constant 0 : index
    %c0_9 = arith.constant 0 : index
    %14 = vector.load %arg5[%c0_8, %c0_9] : memref<256x128xf32, #tpu.memory_space<vmem>>, vector<256x128xf32>
    tpu.vector_store %arg5[%c0_8, %c0_9], %13 {strides = array<i32>} : memref<256x128xf32, #tpu.memory_space<vmem>>, vector<256x128xf32>,
    %15 = arith.truncf %13 : vector<256x128xf32> to vector<256x128xbf16>
    %c0_10 = arith.constant 0 : index
    %c0_11 = arith.constant 0 : index
    %16 = vector.load %arg6[%c0_10, %c0_11] : memref<256x128xbf16, #tpu.memory_space<vmem>>, vector<256x128xbf16>
    tpu.vector_store %arg6[%c0_10, %c0_11], %15 {strides = array<i32>} : memref<256x128xbf16, #tpu.memory_space<vmem>>, vector<256x128xbf16>,
    return
  }
  func.func @transform_0(%arg0: i32, %arg1: i32) -> (i32, i32) {
    %c0_i32 = arith.constant 0 : i32
    return %arg0, %arg1 : i32, i32
  }
  func.func @transform_1(%arg0: i32, %arg1: i32) -> (i32, i32) {
    %c0_i32 = arith.constant 0 : i32
    %c0_i32_0 = arith.constant 0 : i32
    return %arg1, %c0_i32 : i32, i32
  }
  func.func @transform_2(%arg0: i32, %arg1: i32) -> (i32, i32) {
    %c0_i32 = arith.constant 0 : i32
    %c0_i32_0 = arith.constant 0 : i32
    %c0_i32_1 = arith.constant 0 : i32
    return %c0_i32, %c0_i32_0 : i32, i32
  }
  func.func @transform_3(%arg0: i32, %arg1: i32) -> (i32, i32) {
    %c0_i32 = arith.constant 0 : i32
    %c0_i32_0 = arith.constant 0 : i32
    return %arg0, %c0_i32 : i32, i32
  }
  func.func @transform_4(%arg0: i32, %arg1: i32) -> (i32, i32) {
    %c0_i32 = arith.constant 0 : i32
    %c0_i32_0 = arith.constant 0 : i32
    return %arg0, %c0_i32 : i32, i32
  }
}

module attributes {stable_mosaic.version = 11 : i64} {
  func.func @_mm_kernel(%arg0: i32, %arg1: i32, %arg2: memref<128x256xbf16, #tpu.memory_space<vmem>>, %arg3: memref<256x128xbf16, #tpu.memory_space<vmem>>, %arg4: memref<1x128xf32, #tpu.memory_space<vmem>>, %arg5: memref<128x128xf32, #tpu.memory_space<vmem>>, %arg6: memref<128x128xbf16, #tpu.memory_space<vmem>>) attributes {dimension_semantics = [#tpu.dimension_semantics<parallel>, #tpu.dimension_semantics<arbitrary>], iteration_bounds = array<i64: 1, 1>, scalar_prefetch = 0 : i64, scratch_operands = 0 : i64, tpu.core_type = #tpu.core_type<tc>, window_params = [{transform_indices = @transform_0, window_bounds = array<i64: 128, 256>}, {transform_indices = @transform_1, window_bounds = array<i64: 256, 128>}, {pipeline_mode = #tpu.pipeline_mode<synchronous>, transform_indices = @transform_2, window_bounds = array<i64: 1, 128>}, {transform_indices = @transform_3, window_bounds = array<i64: 128, 128>}, {transform_indices = @transform_4, window_bounds = array<i64: 128, 128>}]} {
    %c0 = arith.constant 0 : index
    %c0_0 = arith.constant 0 : index
    %0 = vector.load %arg2[%c0, %c0_0] : memref<128x256xbf16, #tpu.memory_space<vmem>>, vector<128x256xbf16>
    %c0_1 = arith.constant 0 : index
    %c0_2 = arith.constant 0 : index
    %1 = vector.load %arg3[%c0_1, %c0_2] : memref<256x128xbf16, #tpu.memory_space<vmem>>, vector<256x128xbf16>
    %cst = arith.constant dense<0.000000e+00> : vector<128x128xf32>
    %2 = tpu.matmul %0, %1, %cst {dimension_numbers = #tpu.dot_dimension_numbers<[1], [0], [0], [1], [0, 0, 1, 1], [], []>} : vector<128x256xbf16>, vector<256x128xbf16>, vector<128x128xf32> -> vector<128x128xf32>
    %cst_3 = arith.constant dense<0.000000e+00> : vector<128xf32>
    %3 = vector.multi_reduction <add>, %2, %cst_3 [0] : vector<128x128xf32> to vector<128xf32>
    %4 = vector.shape_cast %3 : vector<128xf32> to vector<1x128xf32>
    %cst_4 = arith.constant 7.812500e-03 : f32
    %5 = vector.broadcast %cst_4 : f32 to vector<1x128xf32>
    %6 = arith.mulf %4, %5 : vector<1x128xf32>
    %7 = arith.mulf %2, %2 : vector<128x128xf32>
    %cst_5 = arith.constant dense<0.000000e+00> : vector<128xf32>
    %8 = vector.multi_reduction <add>, %7, %cst_5 [0] : vector<128x128xf32> to vector<128xf32>
    %9 = vector.shape_cast %8 : vector<128xf32> to vector<1x128xf32>
    %cst_6 = arith.constant 7.812500e-03 : f32
    %10 = vector.broadcast %cst_6 : f32 to vector<1x128xf32>
    %11 = arith.mulf %9, %10 : vector<1x128xf32>
    %12 = arith.mulf %6, %6 : vector<1x128xf32>
    %13 = arith.subf %11, %12 : vector<1x128xf32>
    %cst_7 = arith.constant 0.000000e+00 : f32
    %14 = vector.broadcast %cst_7 : f32 to vector<1x128xf32>
    %15 = arith.maximumf %13, %14 : vector<1x128xf32>
    %16 = vector.broadcast %6 : vector<1x128xf32> to vector<128x128xf32>
    %17 = arith.subf %2, %16 : vector<128x128xf32>
    %cst_8 = arith.constant 9.99999974E-6 : f32
    %18 = vector.broadcast %cst_8 : f32 to vector<1x128xf32>
    %19 = arith.addf %15, %18 : vector<1x128xf32>
    %20 = math.rsqrt %19 : vector<1x128xf32>
    %21 = vector.broadcast %20 : vector<1x128xf32> to vector<128x128xf32>
    %22 = arith.mulf %17, %21 : vector<128x128xf32>
    %cst_9 = arith.constant 5.000000e-01 : f32
    %23 = vector.broadcast %cst_9 : f32 to vector<128x128xf32>
    %24 = arith.mulf %23, %22 : vector<128x128xf32>
    %cst_10 = arith.constant 0.707106769 : f32
    %25 = vector.broadcast %cst_10 : f32 to vector<128x128xf32>
    %26 = arith.mulf %22, %25 : vector<128x128xf32>
    %27 = math.erf %26 : vector<128x128xf32>
    %cst_11 = arith.constant 1.000000e+00 : f32
    %28 = vector.broadcast %cst_11 : f32 to vector<128x128xf32>
    %29 = arith.addf %28, %27 : vector<128x128xf32>
    %30 = arith.mulf %24, %29 : vector<128x128xf32>
    %c0_12 = arith.constant 0 : index
    %c0_13 = arith.constant 0 : index
    %31 = vector.load %arg5[%c0_12, %c0_13] : memref<128x128xf32, #tpu.memory_space<vmem>>, vector<128x128xf32>
    tpu.vector_store %arg5[%c0_12, %c0_13], %30 {strides = array<i32>} : memref<128x128xf32, #tpu.memory_space<vmem>>, vector<128x128xf32>,
    %32 = arith.truncf %30 : vector<128x128xf32> to vector<128x128xbf16>
    %c0_14 = arith.constant 0 : index
    %c0_15 = arith.constant 0 : index
    %33 = vector.load %arg6[%c0_14, %c0_15] : memref<128x128xbf16, #tpu.memory_space<vmem>>, vector<128x128xbf16>
    tpu.vector_store %arg6[%c0_14, %c0_15], %32 {strides = array<i32>} : memref<128x128xbf16, #tpu.memory_space<vmem>>, vector<128x128xbf16>,
    return
  }
  func.func @transform_0(%arg0: i32, %arg1: i32) -> (i32, i32) {
    %c0_i32 = arith.constant 0 : i32
    return %arg0, %arg1 : i32, i32
  }
  func.func @transform_1(%arg0: i32, %arg1: i32) -> (i32, i32) {
    %c0_i32 = arith.constant 0 : i32
    %c0_i32_0 = arith.constant 0 : i32
    return %arg1, %c0_i32 : i32, i32
  }
  func.func @transform_2(%arg0: i32, %arg1: i32) -> (i32, i32) {
    %c0_i32 = arith.constant 0 : i32
    %c0_i32_0 = arith.constant 0 : i32
    %c0_i32_1 = arith.constant 0 : i32
    return %c0_i32, %c0_i32_0 : i32, i32
  }
  func.func @transform_3(%arg0: i32, %arg1: i32) -> (i32, i32) {
    %c0_i32 = arith.constant 0 : i32
    %c0_i32_0 = arith.constant 0 : i32
    return %arg0, %c0_i32 : i32, i32
  }
  func.func @transform_4(%arg0: i32, %arg1: i32) -> (i32, i32) {
    %c0_i32 = arith.constant 0 : i32
    %c0_i32_0 = arith.constant 0 : i32
    return %arg0, %c0_i32 : i32, i32
  }
}

module attributes {stable_mosaic.version = 11 : i64} {
  func.func @_mm_kernel(%arg0: i32, %arg1: i32, %arg2: memref<32x512xbf16, #tpu.memory_space<vmem>>, %arg3: memref<512x128xbf16, #tpu.memory_space<vmem>>, %arg4: memref<1x128xf32, #tpu.memory_space<vmem>>, %arg5: memref<32x128xf32, #tpu.memory_space<vmem>>, %arg6: memref<32x128xbf16, #tpu.memory_space<vmem>>) attributes {dimension_semantics = [#tpu.dimension_semantics<parallel>, #tpu.dimension_semantics<arbitrary>], iteration_bounds = array<i64: 1, 1>, scalar_prefetch = 0 : i64, scratch_operands = 0 : i64, tpu.core_type = #tpu.core_type<tc>, window_params = [{transform_indices = @transform_0, window_bounds = array<i64: 32, 512>}, {transform_indices = @transform_1, window_bounds = array<i64: 512, 128>}, {pipeline_mode = #tpu.pipeline_mode<synchronous>, transform_indices = @transform_2, window_bounds = array<i64: 1, 128>}, {transform_indices = @transform_3, window_bounds = array<i64: 32, 128>}, {transform_indices = @transform_4, window_bounds = array<i64: 32, 128>}]} {
    %c0 = arith.constant 0 : index
    %c0_0 = arith.constant 0 : index
    %0 = vector.load %arg2[%c0, %c0_0] : memref<32x512xbf16, #tpu.memory_space<vmem>>, vector<32x512xbf16>
    %c0_1 = arith.constant 0 : index
    %c0_2 = arith.constant 0 : index
    %1 = vector.load %arg3[%c0_1, %c0_2] : memref<512x128xbf16, #tpu.memory_space<vmem>>, vector<512x128xbf16>
    %cst = arith.constant dense<0.000000e+00> : vector<32x128xf32>
    %2 = tpu.matmul %0, %1, %cst {dimension_numbers = #tpu.dot_dimension_numbers<[1], [0], [0], [1], [0, 0, 1, 1], [], []>} : vector<32x512xbf16>, vector<512x128xbf16>, vector<32x128xf32> -> vector<32x128xf32>
    %cst_3 = arith.constant dense<0.000000e+00> : vector<128xf32>
    %3 = vector.multi_reduction <add>, %2, %cst_3 [0] : vector<32x128xf32> to vector<128xf32>
    %4 = vector.shape_cast %3 : vector<128xf32> to vector<1x128xf32>
    %cst_4 = arith.constant 3.125000e-02 : f32
    %5 = vector.broadcast %cst_4 : f32 to vector<1x128xf32>
    %6 = arith.mulf %4, %5 : vector<1x128xf32>
    %7 = arith.mulf %2, %2 : vector<32x128xf32>
    %cst_5 = arith.constant dense<0.000000e+00> : vector<128xf32>
    %8 = vector.multi_reduction <add>, %7, %cst_5 [0] : vector<32x128xf32> to vector<128xf32>
    %9 = vector.shape_cast %8 : vector<128xf32> to vector<1x128xf32>
    %cst_6 = arith.constant 3.125000e-02 : f32
    %10 = vector.broadcast %cst_6 : f32 to vector<1x128xf32>
    %11 = arith.mulf %9, %10 : vector<1x128xf32>
    %12 = arith.mulf %6, %6 : vector<1x128xf32>
    %13 = arith.subf %11, %12 : vector<1x128xf32>
    %cst_7 = arith.constant 0.000000e+00 : f32
    %14 = vector.broadcast %cst_7 : f32 to vector<1x128xf32>
    %15 = arith.maximumf %13, %14 : vector<1x128xf32>
    %16 = vector.broadcast %6 : vector<1x128xf32> to vector<32x128xf32>
    %17 = arith.subf %2, %16 : vector<32x128xf32>
    %cst_8 = arith.constant 9.99999974E-6 : f32
    %18 = vector.broadcast %cst_8 : f32 to vector<1x128xf32>
    %19 = arith.addf %15, %18 : vector<1x128xf32>
    %20 = math.rsqrt %19 : vector<1x128xf32>
    %21 = vector.broadcast %20 : vector<1x128xf32> to vector<32x128xf32>
    %22 = arith.mulf %17, %21 : vector<32x128xf32>
    %cst_9 = arith.constant 5.000000e-01 : f32
    %23 = vector.broadcast %cst_9 : f32 to vector<32x128xf32>
    %24 = arith.mulf %23, %22 : vector<32x128xf32>
    %cst_10 = arith.constant 0.707106769 : f32
    %25 = vector.broadcast %cst_10 : f32 to vector<32x128xf32>
    %26 = arith.mulf %22, %25 : vector<32x128xf32>
    %27 = math.erf %26 : vector<32x128xf32>
    %cst_11 = arith.constant 1.000000e+00 : f32
    %28 = vector.broadcast %cst_11 : f32 to vector<32x128xf32>
    %29 = arith.addf %28, %27 : vector<32x128xf32>
    %30 = arith.mulf %24, %29 : vector<32x128xf32>
    %c0_12 = arith.constant 0 : index
    %c0_13 = arith.constant 0 : index
    %31 = vector.load %arg5[%c0_12, %c0_13] : memref<32x128xf32, #tpu.memory_space<vmem>>, vector<32x128xf32>
    tpu.vector_store %arg5[%c0_12, %c0_13], %30 {strides = array<i32>} : memref<32x128xf32, #tpu.memory_space<vmem>>, vector<32x128xf32>,
    %32 = arith.truncf %30 : vector<32x128xf32> to vector<32x128xbf16>
    %c0_14 = arith.constant 0 : index
    %c0_15 = arith.constant 0 : index
    %33 = vector.load %arg6[%c0_14, %c0_15] : memref<32x128xbf16, #tpu.memory_space<vmem>>, vector<32x128xbf16>
    tpu.vector_store %arg6[%c0_14, %c0_15], %32 {strides = array<i32>} : memref<32x128xbf16, #tpu.memory_space<vmem>>, vector<32x128xbf16>,
    return
  }
  func.func @transform_0(%arg0: i32, %arg1: i32) -> (i32, i32) {
    %c0_i32 = arith.constant 0 : i32
    return %arg0, %arg1 : i32, i32
  }
  func.func @transform_1(%arg0: i32, %arg1: i32) -> (i32, i32) {
    %c0_i32 = arith.constant 0 : i32
    %c0_i32_0 = arith.constant 0 : i32
    return %arg1, %c0_i32 : i32, i32
  }
  func.func @transform_2(%arg0: i32, %arg1: i32) -> (i32, i32) {
    %c0_i32 = arith.constant 0 : i32
    %c0_i32_0 = arith.constant 0 : i32
    %c0_i32_1 = arith.constant 0 : i32
    return %c0_i32, %c0_i32_0 : i32, i32
  }
  func.func @transform_3(%arg0: i32, %arg1: i32) -> (i32, i32) {
    %c0_i32 = arith.constant 0 : i32
    %c0_i32_0 = arith.constant 0 : i32
    return %arg0, %c0_i32 : i32, i32
  }
  func.func @transform_4(%arg0: i32, %arg1: i32) -> (i32, i32) {
    %c0_i32 = arith.constant 0 : i32
    %c0_i32_0 = arith.constant 0 : i32
    return %arg0, %c0_i32 : i32, i32
  }
}

module attributes {stable_mosaic.version = 11 : i64} {
  func.func @_mm_kernel(%arg0: i32, %arg1: i32, %arg2: memref<24x1024xbf16, #tpu.memory_space<vmem>>, %arg3: memref<1024x128xbf16, #tpu.memory_space<vmem>>, %arg4: memref<1x128xf32, #tpu.memory_space<vmem>>, %arg5: memref<24x128xf32, #tpu.memory_space<vmem>>, %arg6: memref<24x128xbf16, #tpu.memory_space<vmem>>) attributes {dimension_semantics = [#tpu.dimension_semantics<parallel>, #tpu.dimension_semantics<arbitrary>], iteration_bounds = array<i64: 1, 1>, scalar_prefetch = 0 : i64, scratch_operands = 0 : i64, tpu.core_type = #tpu.core_type<tc>, window_params = [{transform_indices = @transform_0, window_bounds = array<i64: 24, 1024>}, {transform_indices = @transform_1, window_bounds = array<i64: 1024, 128>}, {pipeline_mode = #tpu.pipeline_mode<synchronous>, transform_indices = @transform_2, window_bounds = array<i64: 1, 128>}, {transform_indices = @transform_3, window_bounds = array<i64: 24, 128>}, {transform_indices = @transform_4, window_bounds = array<i64: 24, 128>}]} {
    %c0 = arith.constant 0 : index
    %c0_0 = arith.constant 0 : index
    %0 = vector.load %arg2[%c0, %c0_0] : memref<24x1024xbf16, #tpu.memory_space<vmem>>, vector<24x1024xbf16>
    %c0_1 = arith.constant 0 : index
    %c0_2 = arith.constant 0 : index
    %1 = vector.load %arg3[%c0_1, %c0_2] : memref<1024x128xbf16, #tpu.memory_space<vmem>>, vector<1024x128xbf16>
    %cst = arith.constant dense<0.000000e+00> : vector<24x128xf32>
    %2 = tpu.matmul %0, %1, %cst {dimension_numbers = #tpu.dot_dimension_numbers<[1], [0], [0], [1], [0, 0, 1, 1], [], []>} : vector<24x1024xbf16>, vector<1024x128xbf16>, vector<24x128xf32> -> vector<24x128xf32>
    %cst_3 = arith.constant dense<0.000000e+00> : vector<128xf32>
    %3 = vector.multi_reduction <add>, %2, %cst_3 [0] : vector<24x128xf32> to vector<128xf32>
    %4 = vector.shape_cast %3 : vector<128xf32> to vector<1x128xf32>
    %cst_4 = arith.constant 0.055555556 : f32
    %5 = vector.broadcast %cst_4 : f32 to vector<1x128xf32>
    %6 = arith.mulf %4, %5 : vector<1x128xf32>
    %7 = arith.mulf %2, %2 : vector<24x128xf32>
    %cst_5 = arith.constant dense<0.000000e+00> : vector<128xf32>
    %8 = vector.multi_reduction <add>, %7, %cst_5 [0] : vector<24x128xf32> to vector<128xf32>
    %9 = vector.shape_cast %8 : vector<128xf32> to vector<1x128xf32>
    %cst_6 = arith.constant 0.055555556 : f32
    %10 = vector.broadcast %cst_6 : f32 to vector<1x128xf32>
    %11 = arith.mulf %9, %10 : vector<1x128xf32>
    %12 = arith.mulf %6, %6 : vector<1x128xf32>
    %13 = arith.subf %11, %12 : vector<1x128xf32>
    %cst_7 = arith.constant 0.000000e+00 : f32
    %14 = vector.broadcast %cst_7 : f32 to vector<1x128xf32>
    %15 = arith.maximumf %13, %14 : vector<1x128xf32>
    %16 = vector.broadcast %6 : vector<1x128xf32> to vector<24x128xf32>
    %17 = arith.subf %2, %16 : vector<24x128xf32>
    %cst_8 = arith.constant 9.99999974E-6 : f32
    %18 = vector.broadcast %cst_8 : f32 to vector<1x128xf32>
    %19 = arith.addf %15, %18 : vector<1x128xf32>
    %20 = math.rsqrt %19 : vector<1x128xf32>
    %21 = vector.broadcast %20 : vector<1x128xf32> to vector<24x128xf32>
    %22 = arith.mulf %17, %21 : vector<24x128xf32>
    %cst_9 = arith.constant 5.000000e-01 : f32
    %23 = vector.broadcast %cst_9 : f32 to vector<24x128xf32>
    %24 = arith.mulf %23, %22 : vector<24x128xf32>
    %cst_10 = arith.constant 0.707106769 : f32
    %25 = vector.broadcast %cst_10 : f32 to vector<24x128xf32>
    %26 = arith.mulf %22, %25 : vector<24x128xf32>
    %27 = math.erf %26 : vector<24x128xf32>
    %cst_11 = arith.constant 1.000000e+00 : f32
    %28 = vector.broadcast %cst_11 : f32 to vector<24x128xf32>
    %29 = arith.addf %28, %27 : vector<24x128xf32>
    %30 = arith.mulf %24, %29 : vector<24x128xf32>
    %c0_12 = arith.constant 0 : index
    %c0_13 = arith.constant 0 : index
    %31 = vector.load %arg5[%c0_12, %c0_13] : memref<24x128xf32, #tpu.memory_space<vmem>>, vector<24x128xf32>
    tpu.vector_store %arg5[%c0_12, %c0_13], %30 {strides = array<i32>} : memref<24x128xf32, #tpu.memory_space<vmem>>, vector<24x128xf32>,
    %32 = arith.truncf %30 : vector<24x128xf32> to vector<24x128xbf16>
    %c0_14 = arith.constant 0 : index
    %c0_15 = arith.constant 0 : index
    %33 = vector.load %arg6[%c0_14, %c0_15] : memref<24x128xbf16, #tpu.memory_space<vmem>>, vector<24x128xbf16>
    tpu.vector_store %arg6[%c0_14, %c0_15], %32 {strides = array<i32>} : memref<24x128xbf16, #tpu.memory_space<vmem>>, vector<24x128xbf16>,
    return
  }
  func.func @transform_0(%arg0: i32, %arg1: i32) -> (i32, i32) {
    %c0_i32 = arith.constant 0 : i32
    return %arg0, %arg1 : i32, i32
  }
  func.func @transform_1(%arg0: i32, %arg1: i32) -> (i32, i32) {
    %c0_i32 = arith.constant 0 : i32
    %c0_i32_0 = arith.constant 0 : i32
    return %arg1, %c0_i32 : i32, i32
  }
  func.func @transform_2(%arg0: i32, %arg1: i32) -> (i32, i32) {
    %c0_i32 = arith.constant 0 : i32
    %c0_i32_0 = arith.constant 0 : i32
    %c0_i32_1 = arith.constant 0 : i32
    return %c0_i32, %c0_i32_0 : i32, i32
  }
  func.func @transform_3(%arg0: i32, %arg1: i32) -> (i32, i32) {
    %c0_i32 = arith.constant 0 : i32
    %c0_i32_0 = arith.constant 0 : i32
    return %arg0, %c0_i32 : i32, i32
  }
  func.func @transform_4(%arg0: i32, %arg1: i32) -> (i32, i32) {
    %c0_i32 = arith.constant 0 : i32
    %c0_i32_0 = arith.constant 0 : i32
    return %arg0, %c0_i32 : i32, i32
  }
}

module attributes {stable_mosaic.version = 11 : i64} {
  func.func @_mm_kernel(%arg0: i32, %arg1: i32, %arg2: memref<8x2048xbf16, #tpu.memory_space<vmem>>, %arg3: memref<2048x128xbf16, #tpu.memory_space<vmem>>, %arg4: memref<1x128xf32, #tpu.memory_space<vmem>>, %arg5: memref<8x128xf32, #tpu.memory_space<vmem>>, %arg6: memref<8x128xbf16, #tpu.memory_space<vmem>>) attributes {dimension_semantics = [#tpu.dimension_semantics<parallel>, #tpu.dimension_semantics<arbitrary>], iteration_bounds = array<i64: 1, 1>, scalar_prefetch = 0 : i64, scratch_operands = 0 : i64, tpu.core_type = #tpu.core_type<tc>, window_params = [{transform_indices = @transform_0, window_bounds = array<i64: 8, 2048>}, {transform_indices = @transform_1, window_bounds = array<i64: 2048, 128>}, {pipeline_mode = #tpu.pipeline_mode<synchronous>, transform_indices = @transform_2, window_bounds = array<i64: 1, 128>}, {transform_indices = @transform_3, window_bounds = array<i64: 8, 128>}, {transform_indices = @transform_4, window_bounds = array<i64: 8, 128>}]} {
    %c0 = arith.constant 0 : index
    %c0_0 = arith.constant 0 : index
    %0 = vector.load %arg2[%c0, %c0_0] : memref<8x2048xbf16, #tpu.memory_space<vmem>>, vector<8x2048xbf16>
    %c0_1 = arith.constant 0 : index
    %c0_2 = arith.constant 0 : index
    %1 = vector.load %arg3[%c0_1, %c0_2] : memref<2048x128xbf16, #tpu.memory_space<vmem>>, vector<2048x128xbf16>
    %cst = arith.constant dense<0.000000e+00> : vector<8x128xf32>
    %2 = tpu.matmul %0, %1, %cst {dimension_numbers = #tpu.dot_dimension_numbers<[1], [0], [0], [1], [0, 0, 1, 1], [], []>} : vector<8x2048xbf16>, vector<2048x128xbf16>, vector<8x128xf32> -> vector<8x128xf32>
    %c0_3 = arith.constant 0 : index
    %c0_4 = arith.constant 0 : index
    %3 = vector.load %arg4[%c0_3, %c0_4] : memref<1x128xf32, #tpu.memory_space<vmem>>, vector<1x128xf32>
    %4 = vector.broadcast %3 : vector<1x128xf32> to vector<8x128xf32>
    %5 = arith.addf %2, %4 : vector<8x128xf32>
    %c0_5 = arith.constant 0 : index
    %c0_6 = arith.constant 0 : index
    %6 = vector.load %arg5[%c0_5, %c0_6] : memref<8x128xf32, #tpu.memory_space<vmem>>, vector<8x128xf32>
    tpu.vector_store %arg5[%c0_5, %c0_6], %5 {strides = array<i32>} : memref<8x128xf32, #tpu.memory_space<vmem>>, vector<8x128xf32>,
    %7 = arith.truncf %5 : vector<8x128xf32> to vector<8x128xbf16>
    %c0_7 = arith.constant 0 : index
    %c0_8 = arith.constant 0 : index
    %8 = vector.load %arg6[%c0_7, %c0_8] : memref<8x128xbf16, #tpu.memory_space<vmem>>, vector<8x128xbf16>
    tpu.vector_store %arg6[%c0_7, %c0_8], %7 {strides = array<i32>} : memref<8x128xbf16, #tpu.memory_space<vmem>>, vector<8x128xbf16>,
    return
  }
  func.func @transform_0(%arg0: i32, %arg1: i32) -> (i32, i32) {
    %c0_i32 = arith.constant 0 : i32
    return %arg0, %arg1 : i32, i32
  }
  func.func @transform_1(%arg0: i32, %arg1: i32) -> (i32, i32) {
    %c0_i32 = arith.constant 0 : i32
    %c0_i32_0 = arith.constant 0 : i32
    return %arg1, %c0_i32 : i32, i32
  }
  func.func @transform_2(%arg0: i32, %arg1: i32) -> (i32, i32) {
    %c0_i32 = arith.constant 0 : i32
    %c0_i32_0 = arith.constant 0 : i32
    %c0_i32_1 = arith.constant 0 : i32
    return %c0_i32, %c0_i32_0 : i32, i32
  }
  func.func @transform_3(%arg0: i32, %arg1: i32) -> (i32, i32) {
    %c0_i32 = arith.constant 0 : i32
    %c0_i32_0 = arith.constant 0 : i32
    return %arg0, %c0_i32 : i32, i32
  }
  func.func @transform_4(%arg0: i32, %arg1: i32) -> (i32, i32) {
    %c0_i32 = arith.constant 0 : i32
    %c0_i32_0 = arith.constant 0 : i32
    return %arg0, %c0_i32 : i32, i32
  }
}

</mosaic_0001>

<bundles_post_ra>
// kernel: forward.5
= control target key start
LH: loop header
LB: loop body
LE: loop exit
PB: predicated region body
PF: predicated region fallthrough
CT: control target
= control target key end

     0   :  { %s1537_s15 = smov 0   ;;  %s1539_s16 = smov 0   ;;  %s1838_s0 = inlined_call_operand.vmem [shape: bf16[512,128], index: 0, kind: input, shape index: {}]   ;;  %s1839_s1 = inlined_call_operand.vmem [shape: bf16[128,128], index: 1, kind: input, shape index: {}]   ;;  %s1840_s2 = inlined_call_operand.vmem [shape: f32[1,128], index: 2, kind: input, shape index: {}]   ;;  %s1841_s3 = inlined_call_operand.vmem [shape: f32[512,128], index: 3, kind: output, shape index: {0}]   ;;  %s1842_s4 = inlined_call_operand.vmem [shape: bf16[512,128], index: 4, kind: output, shape index: {1}]  }
   0x1   :  { %s1541_s17 = smov 0  }
   0x2 LB: > { %s27_s18 = sadd.s32 1, %s1506_s16  ;;  %p1095_p0 = scmp.ge.s32.totalorder %s1510_s17, 1  ;;  %s1510_s17 = sphi %s1541_s17, %s15_s17   ;;  %s1506_s16 = sphi %s1539_s16, %s1844_s16   ;;  %s1502_s15 = sphi %s1537_s15, %s1843_s15  }
   0x3   : > { %p29_p1 = scmp.ge.s32.totalorder %s27_s18, 2  ;;  %p194_p2 = scmp.lt.s32.totalorder %s1510_s17, 3 }
   0x5   : > { %s1846_s18 = smov (%p29_p1, %s27_s18), 0  ;;  %p195_p3 = pnand %p1095_p0, %p194_p2 }
   0x6   : > { %v1400_v0 = vld [vmem:[%s1839_s1] sm:$0xff] (!%p195_p3)   ;;  %s1096_s21 = sshll.u32 (!%p195_p3), %s1502_s15, 5  ;;  %v1401_v1 = vld [vmem:[%s1839_s1 + $0x8] sm:$0xff] (!%p195_p3)   ;;  %v1402_v2 = vld [vmem:[%s1839_s1 + $0x10] sm:$0xff] (!%p195_p3)  }
   0x7   : > { %198 = sbr.rel (%p195_p3) target bundleno = 316 (0x13c), region = 32  ;;  %p234_p4 = scmp.lt.s32.totalorder (!%p195_p3), %s1096_s21, 63  ;;  %1312 = vmatprep.subr.bf16.mxu0 (!%p195_p3), %v1400_v0  ;;  %1360 = vmatprep.subr.bf16.mxu1 (!%p195_p3), %v1400_v0  ;;  %v1403_v3 = vld [vmem:[%s1839_s1 + $0x18] sm:$0xff] (!%p195_p3)   ;;  %v1404_v6 = vld [vmem:[%s1839_s1 + $0x20] sm:$0xff] (!%p195_p3)   ;;  %v1405_v7 = vld [vmem:[%s1839_s1 + $0x28] sm:$0xff] (!%p195_p3)  }
   0x8   : > { %1313 = vmatpush3.bf16.msra.mxu0 (!%p195_p3), %v1400_v0  ;;  %1368 = vmatpush3.bf16.msra.mxu1 (!%p195_p3), %v1400_v0  ;;  %v1406_v8 = vld [vmem:[%s1839_s1 + $0x30] sm:$0xff] (!%p195_p3)   ;;  %v1407_v9 = vld [vmem:[%s1839_s1 + $0x38] sm:$0xff] (!%p195_p3)   ;;  %v1608_v24 = vld [vmem:[%s1840_s2] ss:$0 sm:$0xff] (!%p195_p3) }
   0x9   : > { %1314 = vmatprep.subr.bf16.mxu0 (!%p195_p3), %v1401_v1  ;;  %1361 = vmatprep.subr.bf16.mxu1 (!%p195_p3), %v1401_v1 }
   0xc   : > { %1315 = vmatpush3.bf16.msra.mxu0 (!%p195_p3), %v1401_v1  ;;  %1369 = vmatpush3.bf16.msra.mxu1 (!%p195_p3), %v1401_v1 }
   0xd   : > { %1316 = vmatprep.subr.bf16.mxu0 (!%p195_p3), %v1402_v2  ;;  %1362 = vmatprep.subr.bf16.mxu1 (!%p195_p3), %v1402_v2 }
   0xe   : > { %s1848_s21 = smov (!%p234_p4, %s1096_s21), 63 }
   0xf   : > { %s1097_s26 = sshll.u32 %s1848_s21, 2  ;;  %s1099_s19 = sshll.u32 %s1848_s21, 3 }
  0x10   : > { %s1572_s29 = scalar_lea.vmem %s1838_s0, %s1097_s26  ;;  %1317 = vmatpush3.bf16.msra.mxu0 %v1402_v2  ;;  %1370 = vmatpush3.bf16.msra.mxu1 %v1402_v2  ;;  %s1645_s23 = scalar_lea.vmem %s1841_s3, %s1099_s19 }
  0x11   : > { %v1408_v4 = vld [vmem:[%s1572_s29] sm:$0xff]   ;;  %1318 = vmatprep.subr.bf16.mxu0 %v1403_v3  ;;  %1363 = vmatprep.subr.bf16.mxu1 %v1403_v3  ;;  %v1410_v10 = vld [vmem:[%s1572_s29 + $0x8] sm:$0xff]   ;;  %v1412_v12 = vld [vmem:[%s1572_s29 + $0x10] sm:$0xff]   ;;  %s1678_s27 = scalar_lea.vmem %s1842_s4, %s1097_s26 }
  0x12   : > { %v1409_v5 = vld [vmem:[%s1572_s29 + $0x40] sm:$0xff]   ;;  %1328 = vmatprep.mubr.bf16.mxu0 %v1408_v4  ;;  %v1411_v11 = vld [vmem:[%s1572_s29 + $0x48] sm:$0xff]   ;;  %v1413_v13 = vld [vmem:[%s1572_s29 + $0x50] sm:$0xff]  }
  0x13   : > { %1344 = vmatprep.mubr.bf16.mxu1 %v1409_v5  ;;  %v1414_v14 = vld [vmem:[%s1572_s29 + $0x18] sm:$0xff]   ;;  %v1416_v16 = vld [vmem:[%s1572_s29 + $0x20] sm:$0xff]   ;;  %v1418_v18 = vld [vmem:[%s1572_s29 + $0x28] sm:$0xff]  }
  0x14   : > { %1319 = vmatpush3.bf16.msra.mxu0 %v1403_v3  ;;  %1371 = vmatpush3.bf16.msra.mxu1 %v1403_v3  ;;  %v1415_v15 = vld [vmem:[%s1572_s29 + $0x58] sm:$0xff]   ;;  %v1417_v17 = vld [vmem:[%s1572_s29 + $0x60] sm:$0xff]   ;;  %v1419_v19 = vld [vmem:[%s1572_s29 + $0x68] sm:$0xff]  }
  0x15   : > { %1320 = vmatprep.subr.bf16.mxu0 %v1404_v6  ;;  %1364 = vmatprep.subr.bf16.mxu1 %v1404_v6  ;;  %v1420_v20 = vld [vmem:[%s1572_s29 + $0x30] sm:$0xff]   ;;  %v1422_v22 = vld [vmem:[%s1572_s29 + $0x38] sm:$0xff]  }
  0x16   : > { %v1421_v21 = vld [vmem:[%s1572_s29 + $0x70] sm:$0xff]   ;;  %v1423_v23 = vld [vmem:[%s1572_s29 + $0x78] sm:$0xff]  }
  0x18   : > { %1321 = vmatpush3.bf16.msra.mxu0 %v1404_v6  ;;  %1372 = vmatpush3.bf16.msra.mxu1 %v1404_v6 }
  0x19   : > { %1322 = vmatprep.subr.bf16.mxu0 %v1405_v7  ;;  %1365 = vmatprep.subr.bf16.mxu1 %v1405_v7 }
  0x1c   : > { %1323 = vmatpush3.bf16.msra.mxu0 %v1405_v7  ;;  %1373 = vmatpush3.bf16.msra.mxu1 %v1405_v7 }
  0x1d   : > { %1324 = vmatprep.subr.bf16.mxu0 %v1406_v8  ;;  %1366 = vmatprep.subr.bf16.mxu1 %v1406_v8 }
  0x20   : > { %1325 = vmatpush3.bf16.msra.mxu0 %v1406_v8  ;;  %1374 = vmatpush3.bf16.msra.mxu1 %v1406_v8 }
  0x21   : > { %1326 = vmatprep.subr.bf16.mxu0 %v1407_v9  ;;  %1367 = vmatprep.subr.bf16.mxu1 %v1407_v9 }
  0x24   : > { %1327 = vmatpush3.bf16.msra.mxu0 %v1407_v9  ;;  %1375 = vmatpush3.bf16.msra.mxu1 %v1407_v9 }
  0x27   : > { %1329 = vmatmul.mubr.bf16.vlgmr.msra.gmra.mrb[0].mxu0 %v1410_v10  ;;  %1345 = vmatmul.mubr.bf16.vlgmr.msra.gmra.mrb[0].mxu1 %v1411_v11 }
  0x28   : > { %1332 = vmatprep.mubr.bf16.mxu0 %v1412_v12  ;;  %1348 = vmatprep.mubr.bf16.mxu1 %v1413_v13 }
  0x2f   : > { %1333 = vmatmul.mubr.bf16.gmra.mrb[4].mxu0 %v1414_v14  ;;  %1349 = vmatmul.mubr.bf16.gmra.mrb[4].mxu1 %v1415_v15 }
  0x30   : > { %1336 = vmatprep.mubr.bf16.mxu0 %v1416_v16  ;;  %1352 = vmatprep.mubr.bf16.mxu1 %v1417_v17 }
  0x37   : > { %1337 = vmatmul.mubr.bf16.gmra.mrb[8].mxu0 %v1418_v18  ;;  %1353 = vmatmul.mubr.bf16.gmra.mrb[8].mxu1 %v1419_v19 }
  0x38   : > { %1340 = vmatprep.mubr.bf16.mxu0 %v1420_v20  ;;  %1356 = vmatprep.mubr.bf16.mxu1 %v1421_v21 }
  0x3f   : > { %1341 = vmatmul.mubr.bf16.gmra.mrb[12].mxu0 %v1422_v22  ;;  %1357 = vmatmul.mubr.bf16.gmra.mrb[12].mxu1 %v1423_v23 }
  0xfa   : > { %v1330_v25 = vpop.f32.mrb[0].mxu0  ;;  %v1346_v26 = vpop.f32.mrb[0].mxu1 }
  0xfb   : > { %v503_v27 = vadd.f32 %v1330_v25, %v1608_v24  ;;  %v567_v28 = vadd.f32 %v1346_v26, %v1608_v24  ;;  %v494_v29 = vpop.f32.mrb[1].mxu0  ;;  %v558_v30 = vpop.f32.mrb[1].mxu1 }
  0xfc   : > { %v495_v31 = vadd.f32 %v1608_v24, %v494_v29  ;;  %v559_v32 = vadd.f32 %v1608_v24, %v558_v30  ;;  %v1331_v33 = vpop.f32.mrb[2].mxu0  ;;  %v1347_v34 = vpop.f32.mrb[2].mxu1 }
  0xfd   : > { %v655_v35 = vmul.f32 0.70710677, %v503_v27  ;;  %v671_v36 = vmul.f32 0.70710677, %v567_v28  ;;  %v506_v39 = vadd.f32 %v1331_v33, %v1608_v24  ;;  %v570_v40 = vadd.f32 %v1347_v34, %v1608_v24  ;;  %v497_v41 = vpop.f32.mrb[3].mxu0  ;;  %v561_v42 = vpop.f32.mrb[3].mxu1 }
  0xfe   : > { %v653_v37 = vmul.f32 0.70710677, %v495_v31  ;;  %v669_v38 = vmul.f32 0.70710677, %v559_v32  ;;  %v498_v43 = vadd.f32 %v1608_v24, %v497_v41  ;;  %v562_v44 = vadd.f32 %v1608_v24, %v561_v42 }
  0xff   : > { %1424 = verf.f32 %v655_v35  ;;  %v656_v45 = vmul.f32 0.70710677, %v506_v39  ;;  %v672_v46 = vmul.f32 0.70710677, %v570_v40  ;;  %v623_v57 = vmul.f32 0.5, %v503_v27 }
 0x100   : > { %1426 = verf.f32 %v671_v36  ;;  %v654_v47 = vmul.f32 0.70710677, %v498_v43  ;;  %v670_v49 = vmul.f32 0.70710677, %v562_v44  ;;  %v639_v62 = vmul.f32 0.5, %v567_v28 }
 0x101   : > { %1428 = verf.f32 %v653_v37  ;;  %v621_v63 = vmul.f32 0.5, %v495_v31  ;;  %v637_v2 = vmul.f32 0.5, %v559_v32  ;;  %v624_v9 = vmul.f32 0.5, %v506_v39 }
 0x102   : > { %1430 = verf.f32 %v669_v38  ;;  %v1334_v48 = vpop.f32.mrb[4].mxu0  ;;  %v1350_v51 = vpop.f32.mrb[4].mxu1  ;;  %v640_v10 = vmul.f32 0.5, %v570_v40  ;;  %v622_v11 = vmul.f32 0.5, %v498_v43  ;;  %v638_v20 = vmul.f32 0.5, %v562_v44 }
 0x103   : > { %1432 = verf.f32 %v656_v45  ;;  %v519_v50 = vadd.f32 %v1334_v48, %v1608_v24  ;;  %v510_v52 = vpop.f32.mrb[5].mxu0  ;;  %v583_v53 = vadd.f32 %v1350_v51, %v1608_v24  ;;  %v574_v55 = vpop.f32.mrb[5].mxu1 }
 0x104   : > { %1434 = verf.f32 %v672_v46  ;;  %v1621_v54 = vadd.f32 %v1608_v24, %v510_v52  ;;  %v1335_v56 = vpop.f32.mrb[6].mxu0  ;;  %v1624_v59 = vadd.f32 %v1608_v24, %v574_v55  ;;  %v1351_v60 = vpop.f32.mrb[6].mxu1 }
 0x105   : > { %1436 = verf.f32 %v654_v47  ;;  %v659_v58 = vmul.f32 0.70710677, %v519_v50  ;;  %v513_v61 = vpop.f32.mrb[7].mxu0  ;;  %v675_v0 = vmul.f32 0.70710677, %v583_v53  ;;  %v577_v1 = vpop.f32.mrb[7].mxu1  ;;  %v1630_v5 = vadd.f32 %v1335_v56, %v1608_v24 }
 0x106   : > { %1438 = verf.f32 %v670_v49  ;;  %v657_v3 = vmul.f32 0.70710677, %v1621_v54  ;;  %v673_v4 = vmul.f32 0.70710677, %v1624_v59  ;;  %v1633_v6 = vadd.f32 %v1351_v60, %v1608_v24 }
 0x107   : > { %1440 = verf.f32 %v659_v58  ;;  %v1636_v7 = vadd.f32 %v1608_v24, %v513_v61  ;;  %v660_v14 = vmul.f32 0.70710677, %v1630_v5  ;;  %v1640_v15 = vadd.f32 %v1608_v24, %v577_v1 }
 0x108   : > { %1442 = verf.f32 %v675_v0  ;;  %v1647_v21 = vmul.f32 0.5, %v519_v50  ;;  %v676_v22 = vmul.f32 0.70710677, %v1633_v6  ;;  %v643_v34 = vmul.f32 0.5, %v583_v53 }
 0x109   : > { %v1425_v8 = vpop.eup %1424  ;;  %1444 = verf.f32 %v657_v3  ;;  %v658_v28 = vmul.f32 0.70710677, %v1636_v7  ;;  %v674_v40 = vmul.f32 0.70710677, %v1640_v15  ;;  %v625_v45 = vmul.f32 0.5, %v1621_v54 }
 0x10a   : > { %v1427_v12 = vpop.eup %1426  ;;  %v719_v13 = vadd.f32 1.0, %v1425_v8  ;;  %1446 = verf.f32 %v673_v4  ;;  %v1338_v16 = vpop.f32.mrb[8].mxu0  ;;  %v641_v54 = vmul.f32 0.5, %v1624_v59 }
 0x10b   : > { %v1354_v17 = vpop.f32.mrb[8].mxu1  ;;  %v1429_v18 = vpop.eup %1428  ;;  %v735_v19 = vadd.f32 1.0, %v1427_v12  ;;  %1448 = verf.f32 %v660_v14  ;;  %v1666_v46 = vadd.f32 %v1338_v16, %v1608_v24 }
 0x10c   : > { %v526_v23 = vpop.f32.mrb[9].mxu0  ;;  %v1431_v25 = vpop.eup %1430  ;;  %v751_v26 = vmul.f32 %v719_v13, %v623_v57  ;;  %v717_v27 = vadd.f32 1.0, %v1429_v18  ;;  %1450 = verf.f32 %v676_v22  ;;  %v1670_v50 = vadd.f32 %v1354_v17, %v1608_v24 }
 0x10d   : > { %v1651_v29 = vpop.f32.mrb[9].mxu1  ;;  %v1653_v30 = vpop.f32.mrb[10].mxu0  ;;  %v767_v32 = vmul.f32 %v735_v19, %v639_v62  ;;  %v733_v33 = vadd.f32 1.0, %v1431_v25  ;;  %1452 = verf.f32 %v658_v28  ;;  %v663_v55 = vmul.f32 0.70710677, %v1666_v46 }
 0x10e   : > { %v1433_v31 = vpop.eup %1432  ;;  %v1655_v35 = vpop.f32.mrb[10].mxu1  ;;  %783 = vst [vmem:[%s1645_s23 + $0x10] sm:$0xff] %v751_v26  ;;  %v749_v38 = vmul.f32 %v717_v27, %v621_v63  ;;  %1454 = verf.f32 %v674_v40  ;;  %v1684_v61 = vadd.f32 %v1608_v24, %v526_v23  ;;  %v679_v12 = vmul.f32 0.70710677, %v1670_v50 }
 0x10f   : > { %v1657_v36 = vpop.f32.mrb[11].mxu0  ;;  %v1435_v37 = vpop.eup %1434  ;;  %v720_v39 = vadd.f32 1.0, %v1433_v31  ;;  %799 = vst [vmem:[%s1645_s23 + $0x90] sm:$0xff] %v767_v32  ;;  %v765_v43 = vmul.f32 %v733_v33, %v637_v2  ;;  %1456 = verf.f32 %v663_v55  ;;  %v628_v19 = vmul.f32 0.5, %v1630_v5 }
 0x110   : > { %v1661_v41 = vpop.f32.mrb[11].mxu1  ;;  %v1437_v42 = vpop.eup %1436  ;;  %v736_v44 = vadd.f32 1.0, %v1435_v37  ;;  %781 = vst [vmem:[%s1645_s23] sm:$0xff] %v749_v38  ;;  %1458 = verf.f32 %v679_v12  ;;  %v661_v25 = vmul.f32 0.70710677, %v1684_v61  ;;  %v1721_v31 = vadd.f32 %v1653_v30, %v1608_v24 }
 0x111   : > { %v1439_v47 = vpop.eup %1438  ;;  %v752_v48 = vmul.f32 %v720_v39, %v624_v9  ;;  %v718_v49 = vadd.f32 1.0, %v1437_v42  ;;  %797 = vst [vmem:[%s1645_s23 + $0x80] sm:$0xff] %v765_v43  ;;  %v626_v39 = vmul.f32 0.5, %v1636_v7 }
 0x112   : > { %v1441_v51 = vpop.eup %1440  ;;  %v768_v52 = vmul.f32 %v736_v44, %v640_v10  ;;  %v734_v53 = vadd.f32 1.0, %v1439_v47  ;;  %v1686_v62 = vpop.f32.mrb[12].mxu0  ;;  %1460 = verf.f32 %v661_v25  ;;  %v664_v40 = vmul.f32 0.70710677, %v1721_v31 }
 0x113   : > { %v1443_v56 = vpop.eup %1442  ;;  %784 = vst [vmem:[%s1645_s23 + $0x18] sm:$0xff] %v752_v48  ;;  %v1201_v57 = vpack.c.bf16 %v752_v48, %v751_v26  ;;  %v750_v58 = vmul.f32 %v718_v49, %v622_v11  ;;  %v723_v60 = vadd.f32 1.0, %v1441_v51  ;;  %v1688_v63 = vpop.f32.mrb[12].mxu1  ;;  %v1715_v26 = vadd.f32 %v1608_v24, %v1651_v29 }
 0x114   : > { %v1445_v0 = vpop.eup %1444  ;;  %800 = vst [vmem:[%s1645_s23 + $0x98] sm:$0xff] %v768_v52  ;;  %v1241_v59 = vpack.c.bf16 %v768_v52, %v767_v32  ;;  %v766_v1 = vmul.f32 %v734_v53, %v638_v20  ;;  %v739_v2 = vadd.f32 1.0, %v1443_v56  ;;  %v1691_v3 = vpop.f32.mrb[13].mxu0  ;;  %v1725_v32 = vadd.f32 %v1655_v35, %v1608_v24 }
 0x115   : > { %v1693_v4 = vpop.f32.mrb[13].mxu1  ;;  %v1447_v8 = vpop.eup %1446  ;;  %1273 = vst [vmem:[%s1678_s27 + $0x8] sm:$0xff] %v1201_v57   ;;  %782 = vst [vmem:[%s1645_s23 + $0x8] sm:$0xff] %v750_v58  ;;  %v1196_v9 = vpack.c.bf16 %v750_v58, %v749_v38  ;;  %v755_v10 = vmul.f32 %v723_v60, %v1647_v21  ;;  %v721_v11 = vadd.f32 1.0, %v1445_v0  ;;  %v677_v37 = vmul.f32 0.70710677, %v1715_v26 }
 0x116   : > { %v1699_v13 = vpop.f32.mrb[14].mxu0  ;;  %v1701_v14 = vpop.f32.mrb[14].mxu1  ;;  %1281 = vst [vmem:[%s1678_s27 + $0x48] sm:$0xff] %v1241_v59   ;;  %798 = vst [vmem:[%s1645_s23 + $0x88] sm:$0xff] %v766_v1  ;;  %v1236_v16 = vpack.c.bf16 %v766_v1, %v765_v43  ;;  %v771_v17 = vmul.f32 %v739_v2, %v643_v34  ;;  %v737_v18 = vadd.f32 1.0, %v1447_v8  ;;  %v644_v34 = vmul.f32 0.5, %v1633_v6 }
 0x117   : > { %v1706_v20 = vpop.f32.mrb[15].mxu0  ;;  %v1708_v22 = vpop.f32.mrb[15].mxu1  ;;  %1197 = vst [vmem:[%s1678_s27] sm:$0xff] %v1196_v9   ;;  %787 = vst [vmem:[%s1645_s23 + $0x30] sm:$0xff] %v755_v10  ;;  %v753_v23 = vmul.f32 %v721_v11, %v625_v45  ;;  %v642_v43 = vmul.f32 0.5, %v1640_v15  ;;  %1462 = verf.f32 %v677_v37  ;;  %v680_v6 = vmul.f32 0.70710677, %v1725_v32 }
 0x118   : > { %v1449_v21 = vpop.eup %1448  ;;  %1280 = vst [vmem:[%s1678_s27 + $0x40] sm:$0xff] %v1236_v16   ;;  %803 = vst [vmem:[%s1645_s23 + $0xb0] sm:$0xff] %v771_v17  ;;  %v769_v5 = vmul.f32 %v737_v18, %v641_v54  ;;  %1464 = verf.f32 %v664_v40  ;;  %v1739_v48 = vadd.f32 %v1608_v24, %v1657_v36  ;;  %v1743_v15 = vadd.f32 %v1608_v24, %v1661_v41 }
 0x119   : > { %v1451_v27 = vpop.eup %1450  ;;  %v724_v28 = vadd.f32 1.0, %v1449_v21  ;;  %785 = vst [vmem:[%s1645_s23 + $0x20] sm:$0xff] %v753_v23  ;;  %1466 = verf.f32 %v680_v6  ;;  %v1749_v53 = vadd.f32 %v1686_v62, %v1608_v24  ;;  %v1753_v54 = vadd.f32 %v1688_v63, %v1608_v24 }
 0x11a   : > { %v1453_v33 = vpop.eup %1452  ;;  %v740_v29 = vadd.f32 1.0, %v1451_v27  ;;  %801 = vst [vmem:[%s1645_s23 + $0xa0] sm:$0xff] %v769_v5  ;;  %v631_v36 = vmul.f32 0.5, %v1666_v46  ;;  %v662_v41 = vmul.f32 0.70710677, %v1739_v48  ;;  %v647_v0 = vmul.f32 0.5, %v1670_v50 }
 0x11b   : > { %v756_v38 = vmul.f32 %v724_v28, %v628_v19  ;;  %v722_v30 = vadd.f32 1.0, %v1453_v33  ;;  %v1455_v42 = vpop.eup %1454  ;;  %v678_v57 = vmul.f32 0.70710677, %v1743_v15  ;;  %v667_v58 = vmul.f32 0.70710677, %v1749_v53 }
 0x11c   : > { %v772_v35 = vmul.f32 %v740_v29, %v644_v34  ;;  %v738_v47 = vadd.f32 1.0, %v1455_v42  ;;  %v1457_v49 = vpop.eup %1456  ;;  %1468 = verf.f32 %v662_v41  ;;  %v683_v63 = vmul.f32 0.70710677, %v1753_v54 }
 0x11d   : > { %788 = vst [vmem:[%s1645_s23 + $0x38] sm:$0xff] %v756_v38  ;;  %v1211_v44 = vpack.c.bf16 %v756_v38, %v755_v10  ;;  %v754_v45 = vmul.f32 %v722_v30, %v626_v39  ;;  %v727_v55 = vadd.f32 1.0, %v1457_v49  ;;  %v1459_v60 = vpop.eup %1458  ;;  %1470 = verf.f32 %v678_v57 }
 0x11e   : > { %804 = vst [vmem:[%s1645_s23 + $0xb8] sm:$0xff] %v772_v35  ;;  %v1251_v7 = vpack.c.bf16 %v772_v35, %v771_v17  ;;  %v770_v52 = vmul.f32 %v738_v47, %v642_v43  ;;  %v743_v46 = vadd.f32 1.0, %v1459_v60  ;;  %v1767_v59 = vadd.f32 %v1608_v24, %v1691_v3  ;;  %v1461_v2 = vpop.eup %1460 }
 0x11f   : > { %1275 = vst [vmem:[%s1678_s27 + $0x18] sm:$0xff] %v1211_v44   ;;  %786 = vst [vmem:[%s1645_s23 + $0x28] sm:$0xff] %v754_v45  ;;  %v1206_v51 = vpack.c.bf16 %v754_v45, %v753_v23  ;;  %v759_v62 = vmul.f32 %v727_v55, %v631_v36  ;;  %v1771_v1 = vadd.f32 %v1608_v24, %v1693_v4  ;;  %v629_v8 = vmul.f32 0.5, %v1684_v61 }
 0x120   : > { %1283 = vst [vmem:[%s1678_s27 + $0x58] sm:$0xff] %v1251_v7   ;;  %802 = vst [vmem:[%s1645_s23 + $0xa8] sm:$0xff] %v770_v52  ;;  %v1246_v56 = vpack.c.bf16 %v770_v52, %v769_v5  ;;  %1472 = verf.f32 %v667_v58  ;;  %v1777_v50 = vadd.f32 %v1699_v13, %v1608_v24  ;;  %v1781_v9 = vadd.f32 %v1701_v14, %v1608_v24 }
 0x121   : > { %1274 = vst [vmem:[%s1678_s27 + $0x10] sm:$0xff] %v1206_v51   ;;  %791 = vst [vmem:[%s1645_s23 + $0x50] sm:$0xff] %v759_v62  ;;  %v775_v3 = vmul.f32 %v743_v46, %v647_v0  ;;  %v725_v10 = vadd.f32 1.0, %v1461_v2  ;;  %1474 = verf.f32 %v683_v63  ;;  %v1785_v4 = vadd.f32 %v1608_v24, %v1706_v20  ;;  %v1463_v11 = vpop.eup %1462 }
 0x122   : > { %1282 = vst [vmem:[%s1678_s27 + $0x50] sm:$0xff] %v1246_v56   ;;  %v645_v61 = vmul.f32 0.5, %v1715_v26  ;;  %v665_v12 = vmul.f32 0.70710677, %v1767_v59  ;;  %v681_v13 = vmul.f32 0.70710677, %v1771_v1  ;;  %v1465_v16 = vpop.eup %1464 }
 0x123   : > { %807 = vst [vmem:[%s1645_s23 + $0xd0] sm:$0xff] %v775_v3  ;;  %v757_v17 = vmul.f32 %v725_v10, %v629_v8  ;;  %v741_v14 = vadd.f32 1.0, %v1463_v11  ;;  %v632_v18 = vmul.f32 0.5, %v1721_v31  ;;  %v668_v19 = vmul.f32 0.70710677, %v1777_v50  ;;  %v1467_v21 = vpop.eup %1466 }
 0x124   : > { %v728_v20 = vadd.f32 1.0, %v1465_v16  ;;  %v648_v23 = vmul.f32 0.5, %v1725_v32  ;;  %1476 = verf.f32 %v665_v12  ;;  %v684_v25 = vmul.f32 0.70710677, %v1781_v9 }
 0x125   : > { %789 = vst [vmem:[%s1645_s23 + $0x40] sm:$0xff] %v757_v17  ;;  %v773_v26 = vmul.f32 %v741_v14, %v645_v61  ;;  %v744_v27 = vadd.f32 1.0, %v1467_v21  ;;  %1478 = verf.f32 %v681_v13  ;;  %v666_v5 = vmul.f32 0.70710677, %v1785_v4 }
 0x126   : > { %v760_v28 = vmul.f32 %v728_v20, %v632_v18  ;;  %1480 = verf.f32 %v668_v19  ;;  %v610_v31 = vadd.f32 %v1608_v24, %v1708_v22  ;;  %v1469_v32 = vpop.eup %1468  ;;  %v630_v39 = vmul.f32 0.5, %v1739_v48 }
 0x127   : > { %805 = vst [vmem:[%s1645_s23 + $0xc0] sm:$0xff] %v773_v26  ;;  %v776_v33 = vmul.f32 %v744_v27, %v648_v23  ;;  %1482 = verf.f32 %v684_v25  ;;  %v1471_v37 = vpop.eup %1470  ;;  %v726_v30 = vadd.f32 1.0, %v1469_v32  ;;  %v646_v24 = vmul.f32 0.5, %v1743_v15 }
 0x128   : > { %792 = vst [vmem:[%s1645_s23 + $0x58] sm:$0xff] %v760_v28  ;;  %v1221_v34 = vpack.c.bf16 %v760_v28, %v759_v62  ;;  %1484 = verf.f32 %v666_v5  ;;  %v682_v29 = vmul.f32 0.70710677, %v610_v31  ;;  %v742_v22 = vadd.f32 1.0, %v1471_v37 }
 0x129   : > { %808 = vst [vmem:[%s1645_s23 + $0xd8] sm:$0xff] %v776_v33  ;;  %v1261_v38 = vpack.c.bf16 %v776_v33, %v775_v3  ;;  %v758_v35 = vmul.f32 %v726_v30, %v630_v39  ;;  %v635_v43 = vmul.f32 0.5, %v1749_v53  ;;  %v651_v45 = vmul.f32 0.5, %v1753_v54 }
 0x12a   : > { %v1473_v40 = vpop.eup %1472  ;;  %1277 = vst [vmem:[%s1678_s27 + $0x28] sm:$0xff] %v1221_v34   ;;  %1486 = verf.f32 %v682_v29  ;;  %v774_v44 = vmul.f32 %v742_v22, %v646_v24  ;;  %v633_v53 = vmul.f32 0.5, %v1767_v59  ;;  %v649_v54 = vmul.f32 0.5, %v1771_v1 }
 0x12b   : > { %v1475_v42 = vpop.eup %1474  ;;  %1285 = vst [vmem:[%s1678_s27 + $0x68] sm:$0xff] %v1261_v38   ;;  %v731_v6 = vadd.f32 1.0, %v1473_v40  ;;  %790 = vst [vmem:[%s1645_s23 + $0x48] sm:$0xff] %v758_v35  ;;  %v1216_v7 = vpack.c.bf16 %v758_v35, %v757_v17  ;;  %v636_v58 = vmul.f32 0.5, %v1777_v50  ;;  %v652_v63 = vmul.f32 0.5, %v1781_v9 }
 0x12c   : > { %v747_v47 = vadd.f32 1.0, %v1475_v42  ;;  %806 = vst [vmem:[%s1645_s23 + $0xc8] sm:$0xff] %v774_v44  ;;  %v1256_v49 = vpack.c.bf16 %v774_v44, %v773_v26  ;;  %v634_v2 = vmul.f32 0.5, %v1785_v4  ;;  %v650_v11 = vmul.f32 0.5, %v610_v31 }
 0x12d   : > { %v763_v48 = vmul.f32 %v731_v6, %v635_v43  ;;  %1276 = vst [vmem:[%s1678_s27 + $0x20] sm:$0xff] %v1216_v7  }
 0x12e   : > { %v1477_v15 = vpop.eup %1476  ;;  %v779_v51 = vmul.f32 %v747_v47, %v651_v45  ;;  %1284 = vst [vmem:[%s1678_s27 + $0x60] sm:$0xff] %v1256_v49  }
 0x12f   : > { %v1479_v52 = vpop.eup %1478  ;;  %795 = vst [vmem:[%s1645_s23 + $0x70] sm:$0xff] %v763_v48  ;;  %v729_v36 = vadd.f32 1.0, %v1477_v15 }
 0x130   : > { %v1481_v55 = vpop.eup %1480  ;;  %811 = vst [vmem:[%s1645_s23 + $0xf0] sm:$0xff] %v779_v51  ;;  %v745_v41 = vadd.f32 1.0, %v1479_v52 }
 0x131   : > { %v1483_v56 = vpop.eup %1482  ;;  %v761_v57 = vmul.f32 %v729_v36, %v633_v53  ;;  %v732_v60 = vadd.f32 1.0, %v1481_v55 }
 0x132   : > { %v1485_v62 = vpop.eup %1484  ;;  %v777_v0 = vmul.f32 %v745_v41, %v649_v54  ;;  %v748_v46 = vadd.f32 1.0, %v1483_v56 }
 0x133   : > { %793 = vst [vmem:[%s1645_s23 + $0x60] sm:$0xff] %v761_v57  ;;  %v764_v59 = vmul.f32 %v732_v60, %v636_v58  ;;  %v730_v1 = vadd.f32 1.0, %v1485_v62 }
 0x134   : > { %v1487_v8 = vpop.eup %1486  ;;  %809 = vst [vmem:[%s1645_s23 + $0xe0] sm:$0xff] %v777_v0  ;;  %v780_v50 = vmul.f32 %v748_v46, %v652_v63 }
 0x135   : > { %796 = vst [vmem:[%s1645_s23 + $0x78] sm:$0xff] %v764_v59  ;;  %v1231_v3 = vpack.c.bf16 %v764_v59, %v763_v48  ;;  %v762_v10 = vmul.f32 %v730_v1, %v634_v2  ;;  %v746_v9 = vadd.f32 1.0, %v1487_v8 }
 0x136   : > { %812 = vst [vmem:[%s1645_s23 + $0xf8] sm:$0xff] %v780_v50  ;;  %v1271_v61 = vpack.c.bf16 %v780_v50, %v779_v51 }
 0x137   : > { %1279 = vst [vmem:[%s1678_s27 + $0x38] sm:$0xff] %v1231_v3   ;;  %794 = vst [vmem:[%s1645_s23 + $0x68] sm:$0xff] %v762_v10  ;;  %v1226_v12 = vpack.c.bf16 %v762_v10, %v761_v57  ;;  %v778_v13 = vmul.f32 %v746_v9, %v650_v11 }
 0x138   : > { %1287 = vst [vmem:[%s1678_s27 + $0x78] sm:$0xff] %v1271_v61  }
 0x139   : > { %1278 = vst [vmem:[%s1678_s27 + $0x30] sm:$0xff] %v1226_v12   ;;  %810 = vst [vmem:[%s1645_s23 + $0xe8] sm:$0xff] %v778_v13  ;;  %v1266_v4 = vpack.c.bf16 %v778_v13, %v777_v0 }
 0x13b   : > { %1286 = vst [vmem:[%s1678_s27 + $0x70] sm:$0xff] %v1266_v4  }
 0x13c PF: > { %s15_s17 = sadd.s32 1, %s1510_s17   ;;  %s1843_s15 = smov %s1506_s16 }
 0x13d   : > { %p12_p5 = scmp.ge.s32.totalorder %s15_s17, 4   ;;  %s1844_s16 = smov %s1846_s18 }
 0x13f   :  { %14 = sbr.rel (!%p12_p5) target bundleno = 2 (0x2), region = 77 }

// kernel: forward.6
= control target key start
LH: loop header
LB: loop body
LE: loop exit
PB: predicated region body
PF: predicated region fallthrough
CT: control target
= control target key end

     0   :  { %s1224_s0 = inlined_call_operand.vmem [shape: bf16[128,256], index: 0, kind: input, shape index: {}]   ;;  %s1225_s1 = inlined_call_operand.vmem [shape: bf16[256,128], index: 1, kind: input, shape index: {}]   ;;  %s1226_s2 = inlined_call_operand.vmem [shape: f32[1,128], index: 2, kind: input, shape index: {}]   ;;  %s1227_s3 = inlined_call_operand.hbm [shape: f32[128,128], index: 3, kind: output, shape index: {0}]   ;;  %s1228_s4 = inlined_call_operand.vmem [shape: bf16[128,128], index: 4, kind: output, shape index: {1}]  }
   0x1   :  { %v826_v0 = vld [vmem:[%s1225_s1 + $0x40] sm:$0xff]   ;;  %v828_v2 = vld [vmem:[%s1225_s1 + $0x48] sm:$0xff]   ;;  %v830_v4 = vld [vmem:[%s1225_s1 + $0x50] sm:$0xff]  }
   0x2   :  { %v827_v1 = vld [vmem:[%s1225_s1] sm:$0xff]   ;;  %743 = vmatprep.subr.bf16.mxu0 %v826_v0  ;;  %807 = vmatprep.subr.bf16.mxu1 %v826_v0  ;;  %v829_v3 = vld [vmem:[%s1225_s1 + $0x8] sm:$0xff]   ;;  %v831_v5 = vld [vmem:[%s1225_s1 + $0x10] sm:$0xff]  }
   0x3   :  { %744 = vmatpush3.bf16.msra.mxu0 %v827_v1  ;;  %815 = vmatpush3.bf16.msra.mxu1 %v827_v1  ;;  %v832_v6 = vld [vmem:[%s1225_s1 + $0x58] sm:$0xff]   ;;  %v834_v8 = vld [vmem:[%s1225_s1 + $0x60] sm:$0xff]   ;;  %v836_v10 = vld [vmem:[%s1225_s1 + $0x68] sm:$0xff]  }
   0x4   :  { %745 = vmatprep.subr.bf16.mxu0 %v828_v2  ;;  %808 = vmatprep.subr.bf16.mxu1 %v828_v2  ;;  %v833_v7 = vld [vmem:[%s1225_s1 + $0x18] sm:$0xff]   ;;  %v835_v9 = vld [vmem:[%s1225_s1 + $0x20] sm:$0xff]   ;;  %v837_v12 = vld [vmem:[%s1225_s1 + $0x28] sm:$0xff]  }
   0x5   :  { %v844_v11 = vld [vmem:[%s1224_s0 + $0x4] ss:$8 sps:$4 sm:$0xff]   ;;  %v838_v14 = vld [vmem:[%s1225_s1 + $0x70] sm:$0xff]   ;;  %v840_v16 = vld [vmem:[%s1225_s1 + $0x78] sm:$0xff]  }
   0x6   :  { %v850_v13 = vld [vmem:[%s1224_s0 + $0x44] ss:$8 sps:$4 sm:$0xff]   ;;  %274 = vmatprep.mubr.bf16.mxu0 %v844_v11  ;;  %v839_v15 = vld [vmem:[%s1225_s1 + $0x30] sm:$0xff]  }
   0x7   :  { %746 = vmatpush3.bf16.msra.mxu0 %v829_v3  ;;  %816 = vmatpush3.bf16.msra.mxu1 %v829_v3 }
   0x8   :  { %747 = vmatprep.subr.bf16.mxu0 %v830_v4  ;;  %809 = vmatprep.subr.bf16.mxu1 %v830_v4 }
   0x9   :  { %306 = vmatprep.mubr.bf16.mxu1 %v850_v13 }
   0xb   :  { %748 = vmatpush3.bf16.msra.mxu0 %v831_v5  ;;  %817 = vmatpush3.bf16.msra.mxu1 %v831_v5 }
   0xc   :  { %749 = vmatprep.subr.bf16.mxu0 %v832_v6  ;;  %810 = vmatprep.subr.bf16.mxu1 %v832_v6 }
   0xf   :  { %750 = vmatpush3.bf16.msra.mxu0 %v833_v7  ;;  %818 = vmatpush3.bf16.msra.mxu1 %v833_v7 }
  0x10   :  { %751 = vmatprep.subr.bf16.mxu0 %v834_v8  ;;  %811 = vmatprep.subr.bf16.mxu1 %v834_v8 }
  0x13   :  { %752 = vmatpush3.bf16.msra.mxu0 %v835_v9  ;;  %819 = vmatpush3.bf16.msra.mxu1 %v835_v9 }
  0x14   :  { %753 = vmatprep.subr.bf16.mxu0 %v836_v10  ;;  %812 = vmatprep.subr.bf16.mxu1 %v836_v10 }
  0x17   :  { %754 = vmatpush3.bf16.msra.mxu0 %v837_v12  ;;  %820 = vmatpush3.bf16.msra.mxu1 %v837_v12 }
  0x18   :  { %755 = vmatprep.subr.bf16.mxu0 %v838_v14  ;;  %813 = vmatprep.subr.bf16.mxu1 %v838_v14 }
  0x19   :  { %10 = vsyncpa [#allocation3], 0  ;;  %v841_v17 = vld [vmem:[%s1225_s1 + $0x38] sm:$0xff]   ;;  %v842_v18 = vld [vmem:[%s1224_s0] ss:$8 sps:$4 sm:$0xff]   ;;  %s924_s30 = smov [#allocation2]  }
  0x1a   :  { %v848_v19 = vld [vmem:[%s1224_s0 + $0x40] ss:$8 sps:$4 sm:$0xff]   ;;  %v845_v20 = vld [vmem:[%s1224_s0 + $0x14] ss:$8 sps:$4 sm:$0xff]   ;;  %v847_v22 = vld [vmem:[%s1224_s0 + $0x10] ss:$8 sps:$4 sm:$0xff]  }
  0x1b   :  { %756 = vmatpush3.bf16.msra.mxu0 %v839_v15  ;;  %821 = vmatpush3.bf16.msra.mxu1 %v839_v15  ;;  %v854_v21 = vld [vmem:[%s1224_s0 + $0x54] ss:$8 sps:$4 sm:$0xff]   ;;  %v856_v23 = vld [vmem:[%s1224_s0 + $0x50] ss:$8 sps:$4 sm:$0xff]   ;;  %v851_v24 = vld [vmem:[%s1224_s0 + $0x24] ss:$8 sps:$4 sm:$0xff]  }
  0x1c   :  { %757 = vmatprep.subr.bf16.mxu0 %v840_v16  ;;  %814 = vmatprep.subr.bf16.mxu1 %v840_v16  ;;  %v860_v25 = vld [vmem:[%s1224_s0 + $0x64] ss:$8 sps:$4 sm:$0xff]   ;;  %v853_v26 = vld [vmem:[%s1224_s0 + $0x20] ss:$8 sps:$4 sm:$0xff]   ;;  %v857_v28 = vld [vmem:[%s1224_s0 + $0x34] ss:$8 sps:$4 sm:$0xff]  }
  0x1d   :  { %v862_v27 = vld [vmem:[%s1224_s0 + $0x60] ss:$8 sps:$4 sm:$0xff]   ;;  %v863_v29 = vld [vmem:[%s1224_s0 + $0x74] ss:$8 sps:$4 sm:$0xff]   ;;  %v859_v30 = vld [vmem:[%s1224_s0 + $0x30] ss:$8 sps:$4 sm:$0xff]  }
  0x1e   :  { %v865_v31 = vld [vmem:[%s1224_s0 + $0x70] ss:$8 sps:$4 sm:$0xff]   ;;  %s617_s1 = sshll.u32 %s924_s30, 4  ;;  %s618_s1 = int_to_ptr.vmem [resolvable:$true] %s617_s1 }
  0x1f   :  { %758 = vmatpush3.bf16.msra.mxu0 %v841_v17  ;;  %822 = vmatpush3.bf16.msra.mxu1 %v841_v17  ;;  %s900_s11 = scalar_lea.vmem %s618_s1, 2048  ;;  %p905_p1 = scmp.lt.s32.totalorder %s618_s1, %s618_s1 }
  0x20   :  { %p901_p0 = scmp.ne.s32.totalorder %s618_s1, %s900_s11  ;;  %p906_p2 = scmp.lt.s32.totalorder %s900_s11, %s900_s11 }
  0x22   :  { %275 = vmatmul.mubr.bf16.vlgmr.msra.gmra.mrb[0].mxu0 %v842_v18  ;;  %307 = vmatmul.mubr.bf16.vlgmr.msra.gmra.mrb[0].mxu1 %v848_v19  ;;  %p907_p3 = por %p906_p2, %p905_p1 }
  0x23   :  { %282 = vmatprep.mubr.bf16.mxu0 %v845_v20  ;;  %314 = vmatprep.mubr.bf16.mxu1 %v854_v21 }
  0x24   :  { %p908_p4 = pnand %p907_p3, %p901_p0 }
  0x2a   :  { %283 = vmatmul.mubr.bf16.gmra.mrb[4].mxu0 %v847_v22  ;;  %315 = vmatmul.mubr.bf16.gmra.mrb[4].mxu1 %v856_v23 }
  0x2b   :  { %290 = vmatprep.mubr.bf16.mxu0 %v851_v24  ;;  %322 = vmatprep.mubr.bf16.mxu1 %v860_v25 }
  0x32   :  { %291 = vmatmul.mubr.bf16.gmra.mrb[8].mxu0 %v853_v26  ;;  %323 = vmatmul.mubr.bf16.gmra.mrb[8].mxu1 %v862_v27 }
  0x33   :  { %298 = vmatprep.mubr.bf16.mxu0 %v857_v28  ;;  %330 = vmatprep.mubr.bf16.mxu1 %v863_v29 }
  0x3a   :  { %299 = vmatmul.mubr.bf16.gmra.mrb[12].mxu0 %v859_v30  ;;  %331 = vmatmul.mubr.bf16.gmra.mrb[12].mxu1 %v865_v31 }
  0xf5   :  { %v759_v32 = vpop.f32.mrb[0].mxu0  ;;  %v783_v33 = vpop.f32.mrb[0].mxu1 }
  0xf6   :  { %v760_v34 = vpop.f32.mrb[1].mxu0  ;;  %v784_v35 = vpop.f32.mrb[1].mxu1 }
  0xf7   :  { %v1048_v36 = vadd.f32 %v760_v34, %v759_v32  ;;  %v762_v37 = vpop.f32.mrb[2].mxu0  ;;  %v1050_v38 = vadd.f32 %v784_v35, %v783_v33  ;;  %v786_v39 = vpop.f32.mrb[2].mxu1 }
  0xf8   :  { %v763_v40 = vpop.f32.mrb[3].mxu0  ;;  %v787_v41 = vpop.f32.mrb[3].mxu1 }
  0xf9   :  { %v1052_v42 = vadd.f32 %v763_v40, %v762_v37  ;;  %v1054_v43 = vadd.f32 %v787_v41, %v786_v39  ;;  %v361_v44 = vmul.f32 %v1048_v36, %v1048_v36  ;;  %v369_v39 = vmul.f32 %v1050_v38, %v1050_v38 }
  0xfb   :  { %v339_v45 = vadd.f32 %v1052_v42, %v1048_v36  ;;  %v362_v46 = vmul.f32 %v1052_v42, %v1052_v42 }
  0xfd   :  { %v377_v47 = vadd.f32 %v362_v46, %v361_v44  ;;  %v765_v48 = vpop.f32.mrb[4].mxu0  ;;  %v789_v49 = vpop.f32.mrb[4].mxu1  ;;  %v370_v44 = vmul.f32 %v1054_v43, %v1054_v43 }
  0xfe   :  { %v766_v50 = vpop.f32.mrb[5].mxu0  ;;  %v790_v51 = vpop.f32.mrb[5].mxu1 }
  0xff   :  { %v1062_v52 = vadd.f32 %v766_v50, %v765_v48  ;;  %v768_v53 = vpop.f32.mrb[6].mxu0  ;;  %v1064_v54 = vadd.f32 %v790_v51, %v789_v49  ;;  %v792_v55 = vpop.f32.mrb[6].mxu1 }
 0x100   :  { %v769_v56 = vpop.f32.mrb[7].mxu0  ;;  %v793_v57 = vpop.f32.mrb[7].mxu1 }
 0x101   :  { %v340_v58 = vadd.f32 %v1062_v52, %v339_v45  ;;  %v363_v59 = vmul.f32 %v1062_v52, %v1062_v52  ;;  %v1069_v60 = vadd.f32 %v769_v56, %v768_v53  ;;  %v1071_v61 = vadd.f32 %v793_v57, %v792_v55 }
 0x103   :  { %v378_v62 = vadd.f32 %v377_v47, %v363_v59  ;;  %v341_v63 = vadd.f32 %v1069_v60, %v340_v58  ;;  %v364_v0 = vmul.f32 %v1069_v60, %v1069_v60  ;;  %v371_v47 = vmul.f32 %v1064_v54, %v1064_v54 }
 0x104   :  { %v372_v50 = vmul.f32 %v1071_v61, %v1071_v61 }
 0x105   :  { %v379_v1 = vadd.f32 %v378_v62, %v364_v0  ;;  %v771_v2 = vpop.f32.mrb[8].mxu0  ;;  %v795_v3 = vpop.f32.mrb[8].mxu1 }
 0x106   :  { %v772_v4 = vpop.f32.mrb[9].mxu0  ;;  %v796_v5 = vpop.f32.mrb[9].mxu1 }
 0x107   :  { %v1076_v6 = vadd.f32 %v772_v4, %v771_v2  ;;  %v774_v7 = vpop.f32.mrb[10].mxu0  ;;  %v1078_v8 = vadd.f32 %v796_v5, %v795_v3  ;;  %v798_v9 = vpop.f32.mrb[10].mxu1 }
 0x108   :  { %v775_v10 = vpop.f32.mrb[11].mxu0  ;;  %v799_v11 = vpop.f32.mrb[11].mxu1 }
 0x109   :  { %v342_v12 = vadd.f32 %v1076_v6, %v341_v63  ;;  %v365_v13 = vmul.f32 %v1076_v6, %v1076_v6  ;;  %v1083_v14 = vadd.f32 %v775_v10, %v774_v7  ;;  %v1085_v15 = vadd.f32 %v799_v11, %v798_v9 }
 0x10a   :  { %v373_v56 = vmul.f32 %v1078_v8, %v1078_v8 }
 0x10b   :  { %v380_v16 = vadd.f32 %v379_v1, %v365_v13  ;;  %v343_v17 = vadd.f32 %v1083_v14, %v342_v12  ;;  %v366_v18 = vmul.f32 %v1083_v14, %v1083_v14  ;;  %v374_v62 = vmul.f32 %v1085_v15, %v1085_v15 }
 0x10d   :  { %v381_v19 = vadd.f32 %v380_v16, %v366_v18  ;;  %v777_v20 = vpop.f32.mrb[12].mxu0  ;;  %v801_v21 = vpop.f32.mrb[12].mxu1 }
 0x10e   :  { %v778_v22 = vpop.f32.mrb[13].mxu0  ;;  %v802_v23 = vpop.f32.mrb[13].mxu1 }
 0x10f   :  { %v1090_v24 = vadd.f32 %v778_v22, %v777_v20  ;;  %v780_v25 = vpop.f32.mrb[14].mxu0  ;;  %v1092_v26 = vadd.f32 %v802_v23, %v801_v21  ;;  %v804_v27 = vpop.f32.mrb[14].mxu1 }
 0x110   :  { %v781_v28 = vpop.f32.mrb[15].mxu0  ;;  %v805_v29 = vpop.f32.mrb[15].mxu1 }
 0x111   :  { %v344_v30 = vadd.f32 %v1090_v24, %v343_v17  ;;  %v367_v31 = vmul.f32 %v1090_v24, %v1090_v24  ;;  %v1097_v32 = vadd.f32 %v781_v28, %v780_v25  ;;  %v1099_v33 = vadd.f32 %v805_v29, %v804_v27 }
 0x112   :  { %v375_v63 = vmul.f32 %v1092_v26, %v1092_v26 }
 0x113   :  { %v382_v34 = vadd.f32 %v381_v19, %v367_v31  ;;  %v345_v35 = vadd.f32 %v1097_v32, %v344_v30  ;;  %v368_v37 = vmul.f32 %v1097_v32, %v1097_v32  ;;  %v376_v4 = vmul.f32 %v1099_v33, %v1099_v33 }
 0x115   :  { %v346_v40 = vadd.f32 %v1050_v38, %v345_v35  ;;  %v383_v41 = vadd.f32 %v382_v34, %v368_v37 }
 0x117   :  { %v347_v45 = vadd.f32 %v1054_v43, %v346_v40  ;;  %v384_v46 = vadd.f32 %v383_v41, %v369_v39 }
 0x119   :  { %v385_v48 = vadd.f32 %v384_v46, %v370_v44  ;;  %v348_v49 = vadd.f32 %v1064_v54, %v347_v45 }
 0x11b   :  { %v349_v51 = vadd.f32 %v1071_v61, %v348_v49  ;;  %v386_v53 = vadd.f32 %v385_v48, %v371_v47 }
 0x11d   :  { %v350_v55 = vadd.f32 %v1078_v8, %v349_v51  ;;  %v387_v57 = vadd.f32 %v386_v53, %v372_v50 }
 0x11f   :  { %v388_v58 = vadd.f32 %v387_v57, %v373_v56  ;;  %v351_v59 = vadd.f32 %v1085_v15, %v350_v55 }
 0x121   :  { %v389_v0 = vadd.f32 %v388_v58, %v374_v62  ;;  %v352_v1 = vadd.f32 %v1092_v26, %v351_v59 }
 0x123   :  { %v390_v2 = vadd.f32 %v389_v0, %v375_v63  ;;  %v353_v3 = vadd.f32 %v1099_v33, %v352_v1 }
 0x125   :  { %v354_v5 = vrot.slane %v353_v3, 4  ;;  %v391_v7 = vadd.f32 %v390_v2, %v376_v4 }
 0x127   :  { %v355_v9 = vadd.f32 %v354_v5, %v353_v3  ;;  %v392_v10 = vrot.slane %v391_v7, 4 }
 0x129   :  { %v356_v11 = vrot.slane %v355_v9, 2  ;;  %v393_v12 = vadd.f32 %v392_v10, %v391_v7 }
 0x12b   :  { %v357_v13 = vadd.f32 %v356_v11, %v355_v9  ;;  %v394_v16 = vrot.slane %v393_v12, 2 }
 0x12d   :  { %v358_v17 = vrot.slane %v357_v13, 1  ;;  %v395_v18 = vadd.f32 %v394_v16, %v393_v12 }
 0x12f   :  { %v359_v19 = vadd.f32 %v358_v17, %v357_v13  ;;  %v396_v20 = vrot.slane %v395_v18, 1 }
 0x131   :  { %v360_v21 = vmul.f32 0.0078125, %v359_v19  ;;  %v397_v22 = vadd.f32 %v396_v20, %v395_v18 }
 0x133   :  { %v398_v23 = vmul.f32 0.0078125, %v397_v22  ;;  %v399_v25 = vmul.f32 %v360_v21, %v360_v21  ;;  %v416_v27 = vsub.f32 %v1092_v26, %v360_v21  ;;  %v417_v28 = vsub.f32 %v1099_v33, %v360_v21 }
 0x134   :  { %v402_v29 = vsub.f32 %v1048_v36, %v360_v21  ;;  %v403_v30 = vsub.f32 %v1052_v42, %v360_v21  ;;  %v404_v31 = vsub.f32 %v1062_v52, %v360_v21  ;;  %v405_v34 = vsub.f32 %v1069_v60, %v360_v21 }
 0x135   :  { %v400_v35 = vsub.f32 %v398_v23, %v399_v25  ;;  %v406_v37 = vsub.f32 %v1076_v6, %v360_v21  ;;  %v407_v39 = vsub.f32 %v1083_v14, %v360_v21  ;;  %v408_v40 = vsub.f32 %v1090_v24, %v360_v21 }
 0x136   :  { %v409_v41 = vsub.f32 %v1097_v32, %v360_v21  ;;  %v410_v26 = vsub.f32 %v1050_v38, %v360_v21  ;;  %v411_v33 = vsub.f32 %v1054_v43, %v360_v21  ;;  %v412_v36 = vsub.f32 %v1064_v54, %v360_v21 }
 0x137   :  { %v401_v42 = vmax.f32 %v400_v35, 0.0  ;;  %v413_v52 = vsub.f32 %v1071_v61, %v360_v21  ;;  %v414_v60 = vsub.f32 %v1078_v8, %v360_v21  ;;  %v415_v44 = vsub.f32 %v1085_v15, %v360_v21 }
 0x139   :  { %v418_v6 = vadd.f32 1e-05, %v401_v42 }
 0x13b   :  { %866 = vrsqrt.f32 %v418_v6 }
 0x145   :  { %v867_v14 = vpop.eup %866 }
 0x146   :  { %v434_v45 = vmul.f32 %v867_v14, %v416_v27  ;;  %v435_v24 = vmul.f32 %v867_v14, %v417_v28  ;;  %v420_v46 = vmul.f32 %v867_v14, %v402_v29  ;;  %v421_v32 = vmul.f32 %v867_v14, %v403_v30 }
 0x147   :  { %v422_v47 = vmul.f32 %v867_v14, %v404_v31  ;;  %v1144_v38 = vmul.f32 %v867_v14, %v405_v34  ;;  %v1146_v43 = vmul.f32 %v867_v14, %v406_v37  ;;  %v1148_v54 = vmul.f32 %v867_v14, %v407_v39 }
 0x148   :  { %v466_v48 = vmul.f32 0.70710677, %v434_v45  ;;  %v467_v61 = vmul.f32 0.70710677, %v435_v24  ;;  %v1150_v49 = vmul.f32 %v867_v14, %v408_v40  ;;  %v1152_v8 = vmul.f32 %v867_v14, %v409_v41 }
 0x149   :  { %v1154_v15 = vmul.f32 %v867_v14, %v410_v26  ;;  %v1156_v50 = vmul.f32 %v867_v14, %v411_v33  ;;  %v1158_v51 = vmul.f32 %v867_v14, %v412_v36  ;;  %v1160_v53 = vmul.f32 %v867_v14, %v413_v52 }
 0x14a   :  { %868 = verf.f32 %v466_v48  ;;  %v1162_v55 = vmul.f32 %v867_v14, %v414_v60  ;;  %v1164_v56 = vmul.f32 %v867_v14, %v415_v44  ;;  %v452_v57 = vmul.f32 0.70710677, %v420_v46 }
 0x14b   :  { %870 = verf.f32 %v467_v61  ;;  %v453_v58 = vmul.f32 0.70710677, %v421_v32  ;;  %v454_v59 = vmul.f32 0.70710677, %v422_v47  ;;  %v455_v62 = vmul.f32 0.70710677, %v1144_v38 }
 0x14c   :  { %v456_v63 = vmul.f32 0.70710677, %v1146_v43  ;;  %872 = verf.f32 %v452_v57  ;;  %v457_v0 = vmul.f32 0.70710677, %v1148_v54  ;;  %v458_v1 = vmul.f32 0.70710677, %v1150_v49 }
 0x14d   :  { %874 = verf.f32 %v453_v58  ;;  %v459_v3 = vmul.f32 0.70710677, %v1152_v8  ;;  %v450_v5 = vmul.f32 0.5, %v434_v45  ;;  %v460_v9 = vmul.f32 0.70710677, %v1154_v15 }
 0x14e   :  { %876 = verf.f32 %v454_v59  ;;  %v451_v10 = vmul.f32 0.5, %v435_v24  ;;  %v461_v12 = vmul.f32 0.70710677, %v1156_v50  ;;  %v462_v16 = vmul.f32 0.70710677, %v1158_v51 }
 0x14f   :  { %878 = verf.f32 %v455_v62  ;;  %v463_v18 = vmul.f32 0.70710677, %v1160_v53  ;;  %v464_v19 = vmul.f32 0.70710677, %v1162_v55  ;;  %v465_v21 = vmul.f32 0.70710677, %v1164_v56 }
 0x150   :  { %880 = verf.f32 %v456_v63  ;;  %v436_v25 = vmul.f32 0.5, %v420_v46  ;;  %v437_v29 = vmul.f32 0.5, %v421_v32  ;;  %v438_v34 = vmul.f32 0.5, %v422_v47 }
 0x151   :  { %882 = verf.f32 %v457_v0  ;;  %v439_v40 = vmul.f32 0.5, %v1144_v38  ;;  %v440_v36 = vmul.f32 0.5, %v1146_v43  ;;  %v441_v44 = vmul.f32 0.5, %v1148_v54 }
 0x152   :  { %884 = verf.f32 %v458_v1  ;;  %v442_v46 = vmul.f32 0.5, %v1150_v49  ;;  %v443_v48 = vmul.f32 0.5, %v1152_v8  ;;  %v444_v58 = vmul.f32 0.5, %v1154_v15 }
 0x153   :  { %886 = verf.f32 %v459_v3  ;;  %v445_v63 = vmul.f32 0.5, %v1156_v50  ;;  %v446_v3 = vmul.f32 0.5, %v1158_v51 }
 0x154   :  { %v869_v2 = vpop.eup %868  ;;  %888 = verf.f32 %v460_v9 }
 0x155   :  { %v871_v4 = vpop.eup %870  ;;  %v498_v7 = vadd.f32 1.0, %v869_v2  ;;  %890 = verf.f32 %v461_v12  ;;  %v448_v12 = vmul.f32 0.5, %v1162_v55 }
 0x156   :  { %v499_v11 = vadd.f32 1.0, %v871_v4  ;;  %v873_v22 = vpop.eup %872  ;;  %892 = verf.f32 %v462_v16  ;;  %v449_v16 = vmul.f32 0.5, %v1164_v56 }
 0x157   :  { %v514_v13 = vmul.f32 %v498_v7, %v450_v5  ;;  %v875_v23 = vpop.eup %874  ;;  %894 = verf.f32 %v463_v18  ;;  %v484_v27 = vadd.f32 1.0, %v873_v22  ;;  %v447_v7 = vmul.f32 0.5, %v1160_v53 }
 0x158   :  { %v515_v17 = vmul.f32 %v499_v11, %v451_v10  ;;  %v877_v28 = vpop.eup %876  ;;  %896 = verf.f32 %v464_v19  ;;  %v485_v30 = vadd.f32 1.0, %v875_v23 }
 0x159   :  { %530 = vst [vmem:[#allocation2 + $0x70] sm:$0xff] %v514_v13  ;;  %v879_v31 = vpop.eup %878  ;;  %898 = verf.f32 %v465_v21  ;;  %v486_v35 = vadd.f32 1.0, %v877_v28  ;;  %v500_v37 = vmul.f32 %v484_v27, %v436_v25 }
 0x15a   :  { %531 = vst [vmem:[#allocation2 + $0x78] sm:$0xff] %v515_v17  ;;  %v734_v20 = vpack.c.bf16 %v515_v17, %v514_v13  ;;  %v881_v39 = vpop.eup %880  ;;  %v487_v41 = vadd.f32 1.0, %v879_v31  ;;  %v501_v26 = vmul.f32 %v485_v30, %v437_v29 }
 0x15b   :  { %v883_v33 = vpop.eup %882  ;;  %v488_v42 = vadd.f32 1.0, %v881_v39  ;;  %v502_v52 = vmul.f32 %v486_v35, %v438_v34  ;;  %516 = vst [vmem:[#allocation2] sm:$0xff] %v500_v37 }
 0x15c   :  { %742 = vst [vmem:[%s1228_s4 + $0x38] sm:$0xff] %v734_v20   ;;  %v885_v60 = vpop.eup %884  ;;  %v489_v6 = vadd.f32 1.0, %v883_v33  ;;  %v503_v14 = vmul.f32 %v487_v41, %v439_v40  ;;  %517 = vst [vmem:[#allocation2 + $0x8] sm:$0xff] %v501_v26  ;;  %v699_v45 = vpack.c.bf16 %v501_v26, %v500_v37 }
 0x15d   :  { %v887_v24 = vpop.eup %886  ;;  %v490_v32 = vadd.f32 1.0, %v885_v60  ;;  %v504_v47 = vmul.f32 %v488_v42, %v440_v36  ;;  %518 = vst [vmem:[#allocation2 + $0x10] sm:$0xff] %v502_v52 }
 0x15e   :  { %v889_v38 = vpop.eup %888  ;;  %v491_v43 = vadd.f32 1.0, %v887_v24  ;;  %v505_v61 = vmul.f32 %v489_v6, %v441_v44  ;;  %519 = vst [vmem:[#allocation2 + $0x18] sm:$0xff] %v503_v14  ;;  %700 = vst [vmem:[%s1228_s4] sm:$0xff] %v699_v45   ;;  %v704_v54 = vpack.c.bf16 %v503_v14, %v502_v52 }
 0x15f   :  { %v891_v57 = vpop.eup %890  ;;  %v492_v59 = vadd.f32 1.0, %v889_v38  ;;  %v506_v62 = vmul.f32 %v490_v32, %v442_v46  ;;  %520 = vst [vmem:[#allocation2 + $0x20] sm:$0xff] %v504_v47 }
 0x160   :  { %v893_v49 = vpop.eup %892  ;;  %v493_v0 = vadd.f32 1.0, %v891_v57  ;;  %v507_v1 = vmul.f32 %v491_v43, %v443_v48  ;;  %521 = vst [vmem:[#allocation2 + $0x28] sm:$0xff] %v505_v61  ;;  %736 = vst [vmem:[%s1228_s4 + $0x8] sm:$0xff] %v704_v54   ;;  %v709_v8 = vpack.c.bf16 %v505_v61, %v504_v47 }
 0x161   :  { %v895_v2 = vpop.eup %894  ;;  %v494_v4 = vadd.f32 1.0, %v893_v49  ;;  %v508_v5 = vmul.f32 %v492_v59, %v444_v58  ;;  %522 = vst [vmem:[#allocation2 + $0x30] sm:$0xff] %v506_v62 }
 0x162   :  { %v897_v15 = vpop.eup %896  ;;  %v495_v9 = vadd.f32 1.0, %v895_v2  ;;  %v509_v10 = vmul.f32 %v493_v0, %v445_v63  ;;  %523 = vst [vmem:[#allocation2 + $0x38] sm:$0xff] %v507_v1  ;;  %737 = vst [vmem:[%s1228_s4 + $0x10] sm:$0xff] %v709_v8   ;;  %v714_v50 = vpack.c.bf16 %v507_v1, %v506_v62 }
 0x163   :  { %v899_v11 = vpop.eup %898  ;;  %v496_v51 = vadd.f32 1.0, %v897_v15  ;;  %v510_v13 = vmul.f32 %v494_v4, %v446_v3  ;;  %524 = vst [vmem:[#allocation2 + $0x40] sm:$0xff] %v508_v5 }
 0x164   :  { %v497_v17 = vadd.f32 1.0, %v899_v11  ;;  %v511_v53 = vmul.f32 %v495_v9, %v447_v7  ;;  %525 = vst [vmem:[#allocation2 + $0x48] sm:$0xff] %v509_v10  ;;  %738 = vst [vmem:[%s1228_s4 + $0x18] sm:$0xff] %v714_v50   ;;  %v719_v18 = vpack.c.bf16 %v509_v10, %v508_v5 }
 0x165   :  { %v512_v19 = vmul.f32 %v496_v51, %v448_v12  ;;  %526 = vst [vmem:[#allocation2 + $0x50] sm:$0xff] %v510_v13 }
 0x166   :  { %v513_v20 = vmul.f32 %v497_v17, %v449_v16  ;;  %527 = vst [vmem:[#allocation2 + $0x58] sm:$0xff] %v511_v53  ;;  %739 = vst [vmem:[%s1228_s4 + $0x20] sm:$0xff] %v719_v18   ;;  %v724_v55 = vpack.c.bf16 %v511_v53, %v510_v13 }
 0x167   :  { %528 = vst [vmem:[#allocation2 + $0x60] sm:$0xff] %v512_v19 }
 0x168   :  { %529 = vst [vmem:[#allocation2 + $0x68] sm:$0xff] %v513_v20  ;;  %740 = vst [vmem:[%s1228_s4 + $0x28] sm:$0xff] %v724_v55   ;;  %v729_v56 = vpack.c.bf16 %v513_v20, %v512_v19 }
 0x169   :  { %911 = shalt.err (!%p908_p4)
}
 0x16a   :  { %s912_s14 = scalar_lea.hbm %s1227_s3, 2048 }
 0x16b   :  { %p913_p5 = scmp.ne.s32.totalorder %s1227_s3, %s912_s14  ;;  %p916_p6 = scmp.lt.u32.totalorder %s912_s14, %s1227_s3 }
 0x16d   :  { %p918_p7 = pnand %p916_p6, %p913_p5 }
 0x16f   :  { %921 = shalt.err (!%p918_p7)
}
 0x170   :  { %s925_s19 = smov 128   ;;  %s926_s20 = smov 8   ;;  %741 = vst [vmem:[%s1228_s4 + $0x30] sm:$0xff] %v729_v56  }
 0x171   :  { %623 = dma.vmem_to_hbm [thread:$0]  %s618_s1, 2048, %s1227_s3, [#allocation3], %s925_s19, %s925_s19, %s926_s20  }
 0x172   :  { %922 = dma.done.wait [#allocation3], 2048  }
 0x173   :  { %923 = vsyncadd [#allocation3], 4294965248 }
 0x174   :  { %631 = vsyncpa [#allocation3], 1 }

// kernel: forward.7
= control target key start
LH: loop header
LB: loop body
LE: loop exit
PB: predicated region body
PF: predicated region fallthrough
CT: control target
= control target key end

     0   :  { %s883_s0 = inlined_call_operand.vmem [shape: bf16[32,512], index: 0, kind: input, shape index: {}]   ;;  %s884_s1 = inlined_call_operand.vmem [shape: bf16[512,128], index: 1, kind: input, shape index: {}]   ;;  %s885_s2 = inlined_call_operand.vmem [shape: f32[1,128], index: 2, kind: input, shape index: {}]   ;;  %s886_s3 = inlined_call_operand.hbm [shape: f32[32,128], index: 3, kind: output, shape index: {0}]   ;;  %s887_s4 = inlined_call_operand.vmem [shape: bf16[32,128], index: 4, kind: output, shape index: {1}]  }
   0x1   :  { %v639_v0 = vld [vmem:[%s884_s1 + $0x40] sm:$0xff]   ;;  %v643_v4 = vld [vmem:[%s884_s1 + $0x48] sm:$0xff]   ;;  %v647_v8 = vld [vmem:[%s884_s1 + $0x50] sm:$0xff]  }
   0x2   :  { %v640_v1 = vld [vmem:[%s884_s1 + $0xc0] sm:$0xff]   ;;  %580 = vmatprep.subr.bf16.mxu0 %v639_v0  ;;  %v644_v5 = vld [vmem:[%s884_s1 + $0xc8] sm:$0xff]   ;;  %v648_v9 = vld [vmem:[%s884_s1 + $0xd0] sm:$0xff]  }
   0x3   :  { %v641_v2 = vld [vmem:[%s884_s1] sm:$0xff]   ;;  %608 = vmatprep.subr.bf16.mxu1 %v640_v1  ;;  %v645_v6 = vld [vmem:[%s884_s1 + $0x8] sm:$0xff]   ;;  %v649_v10 = vld [vmem:[%s884_s1 + $0x10] sm:$0xff]  }
   0x4   :  { %v642_v3 = vld [vmem:[%s884_s1 + $0x80] sm:$0xff]   ;;  %581 = vmatpush3.bf16.msra.mxu0 %v641_v2  ;;  %v646_v7 = vld [vmem:[%s884_s1 + $0x88] sm:$0xff]   ;;  %v650_v11 = vld [vmem:[%s884_s1 + $0x90] sm:$0xff]  }
   0x5   :  { %609 = vmatpush3.bf16.msra.mxu1 %v642_v3  ;;  %582 = vmatprep.subr.bf16.mxu0 %v643_v4  ;;  %v651_v12 = vld [vmem:[%s884_s1 + $0x58] sm:$0xff]   ;;  %v655_v16 = vld [vmem:[%s884_s1 + $0x60] sm:$0xff]   ;;  %v659_v20 = vld [vmem:[%s884_s1 + $0x68] sm:$0xff]  }
   0x6   :  { %610 = vmatprep.subr.bf16.mxu1 %v644_v5  ;;  %v652_v13 = vld [vmem:[%s884_s1 + $0xd8] sm:$0xff]   ;;  %v656_v17 = vld [vmem:[%s884_s1 + $0xe0] sm:$0xff]   ;;  %v660_v21 = vld [vmem:[%s884_s1 + $0xe8] sm:$0xff]  }
   0x7   :  { %v653_v14 = vld [vmem:[%s884_s1 + $0x18] sm:$0xff]   ;;  %v657_v18 = vld [vmem:[%s884_s1 + $0x20] sm:$0xff]   ;;  %v661_v22 = vld [vmem:[%s884_s1 + $0x28] sm:$0xff]  }
   0x8   :  { %583 = vmatpush3.bf16.msra.mxu0 %v645_v6  ;;  %v654_v15 = vld [vmem:[%s884_s1 + $0x98] sm:$0xff]   ;;  %v658_v19 = vld [vmem:[%s884_s1 + $0xa0] sm:$0xff]   ;;  %v662_v23 = vld [vmem:[%s884_s1 + $0xa8] sm:$0xff]  }
   0x9   :  { %611 = vmatpush3.bf16.msra.mxu1 %v646_v7  ;;  %584 = vmatprep.subr.bf16.mxu0 %v647_v8  ;;  %v663_v24 = vld [vmem:[%s884_s1 + $0x70] sm:$0xff]   ;;  %v667_v28 = vld [vmem:[%s884_s1 + $0x78] sm:$0xff]  }
   0xa   :  { %612 = vmatprep.subr.bf16.mxu1 %v648_v9  ;;  %v664_v25 = vld [vmem:[%s884_s1 + $0xf0] sm:$0xff]   ;;  %v668_v29 = vld [vmem:[%s884_s1 + $0xf8] sm:$0xff]  }
   0xb   :  { %v665_v26 = vld [vmem:[%s884_s1 + $0x30] sm:$0xff]   ;;  %v669_v30 = vld [vmem:[%s884_s1 + $0x38] sm:$0xff]  }
   0xc   :  { %585 = vmatpush3.bf16.msra.mxu0 %v649_v10  ;;  %v666_v27 = vld [vmem:[%s884_s1 + $0xb0] sm:$0xff]   ;;  %v670_v31 = vld [vmem:[%s884_s1 + $0xb8] sm:$0xff]  }
   0xd   :  { %613 = vmatpush3.bf16.msra.mxu1 %v650_v11  ;;  %586 = vmatprep.subr.bf16.mxu0 %v651_v12  ;;  %v671_v32 = vld [vmem:[%s883_s0] ss:$16 sps:$4 sm:$0xff]   ;;  %v673_v33 = vld [vmem:[%s883_s0 + $0x4] ss:$16 sps:$4 sm:$0xff]   ;;  %v674_v34 = vld [vmem:[%s883_s0 + $0x8] ss:$16 sps:$4 sm:$0xff]  }
   0xe   :  { %614 = vmatprep.subr.bf16.mxu1 %v652_v13  ;;  %v676_v35 = vld [vmem:[%s883_s0 + $0xc] ss:$16 sps:$4 sm:$0xff]   ;;  %354 = vmatprep.mubr.bf16.mxu0 %v673_v33  ;;  %v677_v36 = vld [vmem:[%s883_s0 + $0x24] ss:$16 sps:$4 sm:$0xff]  }
   0xf   :  { %403 = vmatprep.mubr.bf16.mxu1 %v676_v35  ;;  %v679_v37 = vld [vmem:[%s883_s0 + $0x2c] ss:$16 sps:$4 sm:$0xff]  }
  0x10   :  { %587 = vmatpush3.bf16.msra.mxu0 %v653_v14 }
  0x11   :  { %615 = vmatpush3.bf16.msra.mxu1 %v654_v15  ;;  %588 = vmatprep.subr.bf16.mxu0 %v655_v16 }
  0x12   :  { %616 = vmatprep.subr.bf16.mxu1 %v656_v17 }
  0x14   :  { %589 = vmatpush3.bf16.msra.mxu0 %v657_v18 }
  0x15   :  { %617 = vmatpush3.bf16.msra.mxu1 %v658_v19  ;;  %590 = vmatprep.subr.bf16.mxu0 %v659_v20 }
  0x16   :  { %618 = vmatprep.subr.bf16.mxu1 %v660_v21 }
  0x18   :  { %591 = vmatpush3.bf16.msra.mxu0 %v661_v22 }
  0x19   :  { %619 = vmatpush3.bf16.msra.mxu1 %v662_v23  ;;  %592 = vmatprep.subr.bf16.mxu0 %v663_v24 }
  0x1a   :  { %620 = vmatprep.subr.bf16.mxu1 %v664_v25 }
  0x1c   :  { %593 = vmatpush3.bf16.msra.mxu0 %v665_v26 }
  0x1d   :  { %621 = vmatpush3.bf16.msra.mxu1 %v666_v27  ;;  %594 = vmatprep.subr.bf16.mxu0 %v667_v28 }
  0x1e   :  { %622 = vmatprep.subr.bf16.mxu1 %v668_v29 }
  0x20   :  { %595 = vmatpush3.bf16.msra.mxu0 %v669_v30 }
  0x21   :  { %623 = vmatpush3.bf16.msra.mxu1 %v670_v31 }
  0x23   :  { %355 = vmatmul.mubr.bf16.vlgmr.msra.gmra.mrb[0].mxu0 %v671_v32 }
  0x24   :  { %404 = vmatmul.mubr.bf16.vlgmr.msra.gmra.mrb[0].mxu1 %v674_v34  ;;  %362 = vmatprep.mubr.bf16.mxu0 %v677_v36 }
  0x25   :  { %10 = vsyncpa [#allocation3], 0  ;;  %411 = vmatprep.mubr.bf16.mxu1 %v679_v37  ;;  %v681_v38 = vld [vmem:[%s883_s0 + $0x20] ss:$16 sps:$4 sm:$0xff]   ;;  %v682_v39 = vld [vmem:[%s883_s0 + $0x28] ss:$16 sps:$4 sm:$0xff]  }
  0x26   :  { %s717_s0 = smov [#allocation2]  }
  0x27   :  { %s506_s13 = sshll.u32 %s717_s0, 4  ;;  %s507_s13 = int_to_ptr.vmem [resolvable:$true] %s506_s13 }
  0x28   :  { %s693_s16 = scalar_lea.vmem %s507_s13, 512  ;;  %p698_p1 = scmp.lt.s32.totalorder %s507_s13, %s507_s13 }
  0x29   :  { %p694_p0 = scmp.ne.s32.totalorder %s507_s13, %s693_s16  ;;  %p699_p2 = scmp.lt.s32.totalorder %s693_s16, %s693_s16 }
  0x2b   :  { %363 = vmatmul.mubr.bf16.gmra.mrb[4].mxu0 %v681_v38  ;;  %p700_p3 = por %p699_p2, %p698_p1 }
  0x2c   :  { %412 = vmatmul.mubr.bf16.gmra.mrb[4].mxu1 %v682_v39 }
  0x2d   :  { %p701_p4 = pnand %p700_p3, %p694_p0 }
  0xf6   :  { %v596_v40 = vpop.f32.mrb[0].mxu0 }
  0xf7   :  { %v624_v41 = vpop.f32.mrb[0].mxu1  ;;  %v597_v42 = vpop.f32.mrb[1].mxu0 }
  0xf8   :  { %v598_v43 = vadd.f32 %v597_v42, %v596_v40  ;;  %v625_v44 = vpop.f32.mrb[1].mxu1  ;;  %v599_v45 = vpop.f32.mrb[2].mxu0 }
  0xf9   :  { %v626_v46 = vadd.f32 %v625_v44, %v624_v41  ;;  %v627_v47 = vpop.f32.mrb[2].mxu1  ;;  %v600_v48 = vpop.f32.mrb[3].mxu0 }
  0xfa   :  { %v601_v49 = vadd.f32 %v600_v48, %v599_v45  ;;  %v628_v50 = vpop.f32.mrb[3].mxu1 }
  0xfb   :  { %v406_v51 = vadd.f32 %v626_v46, %v598_v43  ;;  %v629_v52 = vadd.f32 %v628_v50, %v627_v47 }
  0xfd   :  { %v409_v53 = vadd.f32 %v629_v52, %v601_v49  ;;  %v430_v55 = vmul.f32 %v406_v51, %v406_v51 }
  0xfe   :  { %v602_v54 = vpop.f32.mrb[4].mxu0 }
  0xff   :  { %v420_v56 = vadd.f32 %v409_v53, %v406_v51  ;;  %v431_v57 = vmul.f32 %v409_v53, %v409_v53  ;;  %v630_v58 = vpop.f32.mrb[4].mxu1  ;;  %v603_v59 = vpop.f32.mrb[5].mxu0 }
 0x100   :  { %v604_v60 = vadd.f32 %v603_v59, %v602_v54  ;;  %v631_v61 = vpop.f32.mrb[5].mxu1  ;;  %v605_v62 = vpop.f32.mrb[6].mxu0 }
 0x101   :  { %v434_v63 = vadd.f32 %v431_v57, %v430_v55  ;;  %v632_v0 = vadd.f32 %v631_v61, %v630_v58  ;;  %v633_v1 = vpop.f32.mrb[6].mxu1  ;;  %v606_v2 = vpop.f32.mrb[7].mxu0 }
 0x102   :  { %v607_v3 = vadd.f32 %v606_v2, %v605_v62  ;;  %v634_v4 = vpop.f32.mrb[7].mxu1 }
 0x103   :  { %v414_v5 = vadd.f32 %v632_v0, %v604_v60  ;;  %v635_v6 = vadd.f32 %v634_v4, %v633_v1 }
 0x105   :  { %v421_v7 = vadd.f32 %v420_v56, %v414_v5  ;;  %v432_v8 = vmul.f32 %v414_v5, %v414_v5  ;;  %v417_v9 = vadd.f32 %v635_v6, %v607_v3 }
 0x107   :  { %v435_v10 = vadd.f32 %v434_v63, %v432_v8  ;;  %v422_v11 = vadd.f32 %v421_v7, %v417_v9  ;;  %v433_v12 = vmul.f32 %v417_v9, %v417_v9 }
 0x109   :  { %v423_v13 = vrot.slane %v422_v11, 4  ;;  %v436_v14 = vadd.f32 %v435_v10, %v433_v12 }
 0x10b   :  { %v424_v15 = vadd.f32 %v423_v13, %v422_v11  ;;  %v437_v16 = vrot.slane %v436_v14, 4 }
 0x10d   :  { %v425_v17 = vrot.slane %v424_v15, 2  ;;  %v438_v18 = vadd.f32 %v437_v16, %v436_v14 }
 0x10f   :  { %v426_v19 = vadd.f32 %v425_v17, %v424_v15  ;;  %v439_v20 = vrot.slane %v438_v18, 2 }
 0x111   :  { %v427_v21 = vrot.slane %v426_v19, 1  ;;  %v440_v22 = vadd.f32 %v439_v20, %v438_v18 }
 0x113   :  { %v428_v23 = vadd.f32 %v427_v21, %v426_v19  ;;  %v441_v24 = vrot.slane %v440_v22, 1 }
 0x115   :  { %v429_v25 = vmul.f32 0.03125, %v428_v23  ;;  %v442_v26 = vadd.f32 %v441_v24, %v440_v22 }
 0x117   :  { %v443_v27 = vmul.f32 0.03125, %v442_v26  ;;  %v444_v28 = vmul.f32 %v429_v25, %v429_v25  ;;  %v449_v29 = vsub.f32 %v414_v5, %v429_v25  ;;  %v450_v30 = vsub.f32 %v417_v9, %v429_v25 }
 0x118   :  { %v447_v31 = vsub.f32 %v406_v51, %v429_v25  ;;  %v448_v32 = vsub.f32 %v409_v53, %v429_v25 }
 0x119   :  { %v445_v33 = vsub.f32 %v443_v27, %v444_v28 }
 0x11b   :  { %v446_v34 = vmax.f32 %v445_v33, 0.0 }
 0x11d   :  { %v451_v35 = vadd.f32 1e-05, %v446_v34 }
 0x11f   :  { %683 = vrsqrt.f32 %v451_v35 }
 0x129   :  { %v684_v36 = vpop.eup %683 }
 0x12a   :  { %v455_v37 = vmul.f32 %v684_v36, %v449_v29  ;;  %v456_v38 = vmul.f32 %v684_v36, %v450_v30  ;;  %v453_v39 = vmul.f32 %v684_v36, %v447_v31  ;;  %v454_v40 = vmul.f32 %v684_v36, %v448_v32 }
 0x12c   :  { %v463_v41 = vmul.f32 0.70710677, %v455_v37  ;;  %v464_v42 = vmul.f32 0.70710677, %v456_v38  ;;  %v461_v43 = vmul.f32 0.70710677, %v453_v39 }
 0x12d   :  { %v462_v44 = vmul.f32 0.70710677, %v454_v40  ;;  %v459_v47 = vmul.f32 0.5, %v455_v37  ;;  %v460_v50 = vmul.f32 0.5, %v456_v38  ;;  %v457_v54 = vmul.f32 0.5, %v453_v39 }
 0x12e   :  { %685 = verf.f32 %v463_v41  ;;  %v458_v57 = vmul.f32 0.5, %v454_v40 }
 0x12f   :  { %687 = verf.f32 %v464_v42 }
 0x130   :  { %689 = verf.f32 %v461_v43 }
 0x131   :  { %691 = verf.f32 %v462_v44 }
 0x138   :  { %v686_v45 = vpop.eup %685 }
 0x139   :  { %v688_v46 = vpop.eup %687  ;;  %v471_v48 = vadd.f32 1.0, %v686_v45 }
 0x13a   :  { %v690_v49 = vpop.eup %689  ;;  %v472_v51 = vadd.f32 1.0, %v688_v46 }
 0x13b   :  { %v692_v52 = vpop.eup %691  ;;  %v475_v53 = vmul.f32 %v471_v48, %v459_v47  ;;  %v469_v55 = vadd.f32 1.0, %v690_v49 }
 0x13c   :  { %v476_v56 = vmul.f32 %v472_v51, %v460_v50  ;;  %v470_v58 = vadd.f32 1.0, %v692_v52 }
 0x13d   :  { %479 = vst [vmem:[#allocation2 + $0x10] sm:$0xff] %v475_v53  ;;  %v473_v59 = vmul.f32 %v469_v55, %v457_v54 }
 0x13e   :  { %480 = vst [vmem:[#allocation2 + $0x18] sm:$0xff] %v476_v56  ;;  %v577_v60 = vpack.c.bf16 %v476_v56, %v475_v53  ;;  %v474_v61 = vmul.f32 %v470_v58, %v458_v57 }
 0x13f   :  { %477 = vst [vmem:[#allocation2] sm:$0xff] %v473_v59 }
 0x140   :  { %579 = vst [vmem:[%s887_s4 + $0x8] sm:$0xff] %v577_v60   ;;  %478 = vst [vmem:[#allocation2 + $0x8] sm:$0xff] %v474_v61  ;;  %v572_v62 = vpack.c.bf16 %v474_v61, %v473_v59 }
 0x141   :  { %704 = shalt.err (!%p701_p4)
}
 0x142   :  { %s705_s19 = scalar_lea.hbm %s886_s3, 512 }
 0x143   :  { %p706_p5 = scmp.ne.s32.totalorder %s886_s3, %s705_s19  ;;  %p709_p6 = scmp.lt.u32.totalorder %s705_s19, %s886_s3 }
 0x145   :  { %p711_p7 = pnand %p709_p6, %p706_p5 }
 0x147   :  { %714 = shalt.err (!%p711_p7)
}
 0x148   :  { %s718_s23 = smov 128   ;;  %s719_s24 = smov 8   ;;  %573 = vst [vmem:[%s887_s4] sm:$0xff] %v572_v62  }
 0x149   :  { %512 = dma.vmem_to_hbm [thread:$0]  %s507_s13, 512, %s886_s3, [#allocation3], %s718_s23, %s718_s23, %s719_s24  }
 0x14a   :  { %715 = dma.done.wait [#allocation3], 512  }
 0x14b   :  { %716 = vsyncadd [#allocation3], 4294966784 }
 0x14c   :  { %520 = vsyncpa [#allocation3], 1 }

// kernel: forward.8
= control target key start
LH: loop header
LB: loop body
LE: loop exit
PB: predicated region body
PF: predicated region fallthrough
CT: control target
= control target key end

     0   :  { %s1426_s1 = inlined_call_operand.vmem [shape: bf16[1024,128], index: 1, kind: input, shape index: {}]   ;;  %s1427_s2 = inlined_call_operand.vmem [shape: f32[1,128], index: 2, kind: input, shape index: {}]   ;;  %s1428_s0 = inlined_call_operand.vmem [shape: bf16[24,1024], index: 0, kind: input, shape index: {}]   ;;  %s1429_s3 = inlined_call_operand.vmem [shape: f32[24,128], index: 3, kind: output, shape index: {0}]   ;;  %s1430_s4 = inlined_call_operand.vmem [shape: bf16[24,128], index: 4, kind: output, shape index: {1}]  }
   0x1   :  { %v1078_v0 = vld [vmem:[%s1426_s1 + $0x40] sm:$0xff]   ;;  %v1082_v4 = vld [vmem:[%s1426_s1 + $0x48] sm:$0xff]   ;;  %v1086_v8 = vld [vmem:[%s1426_s1 + $0x50] sm:$0xff]  }
   0x2   :  { %v1079_v1 = vld [vmem:[%s1426_s1 + $0xc0] sm:$0xff]   ;;  %966 = vmatprep.subr.bf16.mxu0 %v1078_v0  ;;  %v1083_v5 = vld [vmem:[%s1426_s1 + $0xc8] sm:$0xff]   ;;  %v1087_v9 = vld [vmem:[%s1426_s1 + $0xd0] sm:$0xff]  }
   0x3   :  { %v1080_v2 = vld [vmem:[%s1426_s1] sm:$0xff]   ;;  %994 = vmatprep.subr.bf16.mxu1 %v1079_v1  ;;  %v1084_v6 = vld [vmem:[%s1426_s1 + $0x8] sm:$0xff]   ;;  %v1088_v10 = vld [vmem:[%s1426_s1 + $0x10] sm:$0xff]  }
   0x4   :  { %v1081_v3 = vld [vmem:[%s1426_s1 + $0x80] sm:$0xff]   ;;  %967 = vmatpush3.bf16.msra.mxu0 %v1080_v2  ;;  %v1085_v7 = vld [vmem:[%s1426_s1 + $0x88] sm:$0xff]   ;;  %v1089_v11 = vld [vmem:[%s1426_s1 + $0x90] sm:$0xff]  }
   0x5   :  { %995 = vmatpush3.bf16.msra.mxu1 %v1081_v3  ;;  %968 = vmatprep.subr.bf16.mxu0 %v1082_v4  ;;  %v1090_v12 = vld [vmem:[%s1426_s1 + $0x58] sm:$0xff]   ;;  %v1094_v16 = vld [vmem:[%s1426_s1 + $0x60] sm:$0xff]   ;;  %v1098_v20 = vld [vmem:[%s1426_s1 + $0x68] sm:$0xff]  }
   0x6   :  { %996 = vmatprep.subr.bf16.mxu1 %v1083_v5  ;;  %v1091_v13 = vld [vmem:[%s1426_s1 + $0xd8] sm:$0xff]   ;;  %v1095_v17 = vld [vmem:[%s1426_s1 + $0xe0] sm:$0xff]   ;;  %v1099_v21 = vld [vmem:[%s1426_s1 + $0xe8] sm:$0xff]  }
   0x7   :  { %v1092_v14 = vld [vmem:[%s1426_s1 + $0x18] sm:$0xff]   ;;  %v1096_v18 = vld [vmem:[%s1426_s1 + $0x20] sm:$0xff]   ;;  %v1100_v22 = vld [vmem:[%s1426_s1 + $0x28] sm:$0xff]  }
   0x8   :  { %969 = vmatpush3.bf16.msra.mxu0 %v1084_v6  ;;  %v1093_v15 = vld [vmem:[%s1426_s1 + $0x98] sm:$0xff]   ;;  %v1097_v19 = vld [vmem:[%s1426_s1 + $0xa0] sm:$0xff]   ;;  %v1101_v23 = vld [vmem:[%s1426_s1 + $0xa8] sm:$0xff]  }
   0x9   :  { %997 = vmatpush3.bf16.msra.mxu1 %v1085_v7  ;;  %970 = vmatprep.subr.bf16.mxu0 %v1086_v8  ;;  %v1102_v24 = vld [vmem:[%s1426_s1 + $0x70] sm:$0xff]   ;;  %v1106_v28 = vld [vmem:[%s1426_s1 + $0x78] sm:$0xff]   ;;  %v17_v32 = vld [vmem:[%s1428_s0] sm:$0xff] }
   0xa   :  { %998 = vmatprep.subr.bf16.mxu1 %v1087_v9  ;;  %v1103_v25 = vld [vmem:[%s1426_s1 + $0xf0] sm:$0xff]   ;;  %v1107_v29 = vld [vmem:[%s1426_s1 + $0xf8] sm:$0xff]   ;;  %v21_v33 = vld [vmem:[%s1428_s0 + $0x20] sm:$0xff] }
   0xb   :  { %v1104_v26 = vld [vmem:[%s1426_s1 + $0x30] sm:$0xff]   ;;  %v1108_v30 = vld [vmem:[%s1426_s1 + $0x38] sm:$0xff]   ;;  %v18_v34 = vld [vmem:[%s1428_s0 + $0x8] sm:$0xff]  ;;  %v875_v35 = vcombine.low %v17_v32, %v21_v33  ;;  %v876_v36 = vcombine.high %v17_v32, %v21_v33 }
   0xc   :  { %971 = vmatpush3.bf16.msra.mxu0 %v1088_v10  ;;  %v1105_v27 = vld [vmem:[%s1426_s1 + $0xb0] sm:$0xff]   ;;  %v1109_v31 = vld [vmem:[%s1426_s1 + $0xb8] sm:$0xff]   ;;  %v22_v37 = vld [vmem:[%s1428_s0 + $0x28] sm:$0xff] }
   0xd   :  { %999 = vmatpush3.bf16.msra.mxu1 %v1089_v11  ;;  %972 = vmatprep.subr.bf16.mxu0 %v1090_v12  ;;  %v877_v38 = vcombine.low %v18_v34, %v22_v37  ;;  %v878_v39 = vcombine.high %v18_v34, %v22_v37  ;;  %v1110_v40 = vld [vmem:[%s1426_s1 + $0x140] sm:$0xff]   ;;  %v1114_v44 = vld [vmem:[%s1426_s1 + $0x148] sm:$0xff]   ;;  %v1118_v48 = vld [vmem:[%s1426_s1 + $0x150] sm:$0xff]  }
   0xe   :  { %1000 = vmatprep.subr.bf16.mxu1 %v1091_v13  ;;  %641 = vmatprep.mubr.bf16.mxu0 %v876_v36  ;;  %v1111_v41 = vld [vmem:[%s1426_s1 + $0x1c0] sm:$0xff]   ;;  %v1115_v45 = vld [vmem:[%s1426_s1 + $0x1c8] sm:$0xff]   ;;  %v1119_v49 = vld [vmem:[%s1426_s1 + $0x1d0] sm:$0xff]  }
   0xf   :  { %689 = vmatprep.mubr.bf16.mxu1 %v878_v39  ;;  %v1112_v42 = vld [vmem:[%s1426_s1 + $0x100] sm:$0xff]   ;;  %v1116_v46 = vld [vmem:[%s1426_s1 + $0x108] sm:$0xff]   ;;  %v1120_v50 = vld [vmem:[%s1426_s1 + $0x110] sm:$0xff]  }
  0x10   :  { %973 = vmatpush3.bf16.msra.mxu0 %v1092_v14  ;;  %v1113_v43 = vld [vmem:[%s1426_s1 + $0x180] sm:$0xff]   ;;  %v1117_v47 = vld [vmem:[%s1426_s1 + $0x188] sm:$0xff]   ;;  %v1121_v51 = vld [vmem:[%s1426_s1 + $0x190] sm:$0xff]  }
  0x11   :  { %1001 = vmatpush3.bf16.msra.mxu1 %v1093_v15  ;;  %974 = vmatprep.subr.bf16.mxu0 %v1094_v16  ;;  %v1122_v52 = vld [vmem:[%s1426_s1 + $0x158] sm:$0xff]   ;;  %v1126_v56 = vld [vmem:[%s1426_s1 + $0x160] sm:$0xff]   ;;  %v1131_v62 = vld [vmem:[%s1426_s1 + $0x168] sm:$0xff]  }
  0x12   :  { %1002 = vmatprep.subr.bf16.mxu1 %v1095_v17  ;;  %v1123_v53 = vld [vmem:[%s1426_s1 + $0x1d8] sm:$0xff]   ;;  %v1127_v57 = vld [vmem:[%s1426_s1 + $0x1e0] sm:$0xff]   ;;  %v1132_v0 = vld [vmem:[%s1426_s1 + $0x1e8] sm:$0xff]  }
  0x13   :  { %v1124_v54 = vld [vmem:[%s1426_s1 + $0x118] sm:$0xff]   ;;  %v1128_v58 = vld [vmem:[%s1426_s1 + $0x120] sm:$0xff]   ;;  %v1134_v1 = vld [vmem:[%s1426_s1 + $0x128] sm:$0xff]  }
  0x14   :  { %975 = vmatpush3.bf16.msra.mxu0 %v1096_v18  ;;  %v1125_v55 = vld [vmem:[%s1426_s1 + $0x198] sm:$0xff]   ;;  %v1129_v59 = vld [vmem:[%s1426_s1 + $0x1a0] sm:$0xff]   ;;  %v1135_v2 = vld [vmem:[%s1426_s1 + $0x1a8] sm:$0xff]  }
  0x15   :  { %1003 = vmatpush3.bf16.msra.mxu1 %v1097_v19  ;;  %976 = vmatprep.subr.bf16.mxu0 %v1098_v20  ;;  %v25_v60 = vld [vmem:[%s1428_s0 + $0x40] sm:$0xff]  ;;  %v26_v3 = vld [vmem:[%s1428_s0 + $0x48] sm:$0xff]  ;;  %v1138_v6 = vld [vmem:[%s1426_s1 + $0x170] sm:$0xff]  }
  0x16   :  { %1004 = vmatprep.subr.bf16.mxu1 %v1099_v21  ;;  %v884_v61 = vcombine.high %v25_v60, %v25_v60  ;;  %v883_v63 = vcombine.low %v25_v60, %v25_v60  ;;  %v886_v4 = vcombine.high %v26_v3, %v26_v3  ;;  %v885_v5 = vcombine.low %v26_v3, %v26_v3  ;;  %v1139_v7 = vld [vmem:[%s1426_s1 + $0x1f0] sm:$0xff]   ;;  %v1142_v10 = vld [vmem:[%s1426_s1 + $0x178] sm:$0xff]  }
  0x17   :  { %v1140_v8 = vld [vmem:[%s1426_s1 + $0x130] sm:$0xff]   ;;  %v1143_v11 = vld [vmem:[%s1426_s1 + $0x1f8] sm:$0xff]  }
  0x18   :  { %977 = vmatpush3.bf16.msra.mxu0 %v1100_v22  ;;  %v1141_v9 = vld [vmem:[%s1426_s1 + $0x1b0] sm:$0xff]   ;;  %v1144_v12 = vld [vmem:[%s1426_s1 + $0x138] sm:$0xff]  }
  0x19   :  { %1005 = vmatpush3.bf16.msra.mxu1 %v1101_v23  ;;  %978 = vmatprep.subr.bf16.mxu0 %v1102_v24  ;;  %v1145_v13 = vld [vmem:[%s1426_s1 + $0x1b8] sm:$0xff]   ;;  %v19_v14 = vld [vmem:[%s1428_s0 + $0x10] sm:$0xff] }
  0x1a   :  { %1006 = vmatprep.subr.bf16.mxu1 %v1103_v25  ;;  %v23_v15 = vld [vmem:[%s1428_s0 + $0x30] sm:$0xff]  ;;  %v20_v16 = vld [vmem:[%s1428_s0 + $0x18] sm:$0xff] }
  0x1b   :  { %v879_v17 = vcombine.low %v19_v14, %v23_v15  ;;  %v880_v18 = vcombine.high %v19_v14, %v23_v15  ;;  %v24_v19 = vld [vmem:[%s1428_s0 + $0x38] sm:$0xff]  ;;  %v27_v20 = vld [vmem:[%s1428_s0 + $0x50] sm:$0xff] }
  0x1c   :  { %979 = vmatpush3.bf16.msra.mxu0 %v1104_v26  ;;  %v28_v21 = vld [vmem:[%s1428_s0 + $0x58] sm:$0xff]  ;;  %v881_v22 = vcombine.low %v20_v16, %v24_v19  ;;  %v882_v23 = vcombine.high %v20_v16, %v24_v19  ;;  %v888_v24 = vcombine.high %v27_v20, %v27_v20  ;;  %v887_v26 = vcombine.low %v27_v20, %v27_v20 }
  0x1d   :  { %1007 = vmatpush3.bf16.msra.mxu1 %v1105_v27  ;;  %980 = vmatprep.subr.bf16.mxu0 %v1106_v28  ;;  %v890_v25 = vcombine.high %v28_v21, %v28_v21  ;;  %v889_v27 = vcombine.low %v28_v21, %v28_v21 }
  0x1e   :  { %1008 = vmatprep.subr.bf16.mxu1 %v1107_v29 }
  0x20   :  { %981 = vmatpush3.bf16.msra.mxu0 %v1108_v30 }
  0x21   :  { %1009 = vmatpush3.bf16.msra.mxu1 %v1109_v31  ;;  %1022 = vmatprep.subr.bf16.mxu0 %v1110_v40 }
  0x22   :  { %1050 = vmatprep.subr.bf16.mxu1 %v1111_v41 }
  0x23   :  { %642 = vmatmul.mubr.bf16.vlgmr.msra.gmra.mrb[0].mxu0 %v875_v35 }
  0x24   :  { %690 = vmatmul.mubr.bf16.vlgmr.msra.gmra.mrb[0].mxu1 %v877_v38  ;;  %1023 = vmatpush3.bf16.msra.mxu0 %v1112_v42 }
  0x25   :  { %1051 = vmatpush3.bf16.msra.mxu1 %v1113_v43  ;;  %1024 = vmatprep.subr.bf16.mxu0 %v1114_v44 }
  0x26   :  { %1052 = vmatprep.subr.bf16.mxu1 %v1115_v45  ;;  %649 = vmatprep.mubr.bf16.mxu0 %v884_v61 }
  0x27   :  { %697 = vmatprep.mubr.bf16.mxu1 %v886_v4 }
  0x28   :  { %1025 = vmatpush3.bf16.msra.mxu0 %v1116_v46 }
  0x29   :  { %1053 = vmatpush3.bf16.msra.mxu1 %v1117_v47  ;;  %1026 = vmatprep.subr.bf16.mxu0 %v1118_v48 }
  0x2a   :  { %1054 = vmatprep.subr.bf16.mxu1 %v1119_v49 }
  0x2b   :  { %650 = vmatmul.mubr.bf16.gmra.mrb[4].mxu0 %v883_v63 }
  0x2c   :  { %1027 = vmatpush3.bf16.msra.mxu0 %v1120_v50  ;;  %698 = vmatmul.mubr.bf16.gmra.mrb[4].mxu1 %v885_v5 }
  0x2d   :  { %1055 = vmatpush3.bf16.msra.mxu1 %v1121_v51  ;;  %1028 = vmatprep.subr.bf16.mxu0 %v1122_v52 }
  0x2e   :  { %1056 = vmatprep.subr.bf16.mxu1 %v1123_v53  ;;  %737 = vmatprep.mubr.bf16.mxu0 %v880_v18 }
  0x2f   :  { %785 = vmatprep.mubr.bf16.mxu1 %v882_v23 }
  0x30   :  { %1029 = vmatpush3.bf16.msra.mxu0 %v1124_v54 }
  0x31   :  { %1057 = vmatpush3.bf16.msra.mxu1 %v1125_v55  ;;  %1030 = vmatprep.subr.bf16.mxu0 %v1126_v56 }
  0x32   :  { %1058 = vmatprep.subr.bf16.mxu1 %v1127_v57 }
  0x34   :  { %1031 = vmatpush3.bf16.msra.mxu0 %v1128_v58 }
  0x35   :  { %1059 = vmatpush3.bf16.msra.mxu1 %v1129_v59  ;;  %1032 = vmatprep.subr.bf16.mxu0 %v1131_v62 }
  0x36   :  { %1060 = vmatprep.subr.bf16.mxu1 %v1132_v0 }
  0x38   :  { %1033 = vmatpush3.bf16.msra.mxu0 %v1134_v1 }
  0x39   :  { %1061 = vmatpush3.bf16.msra.mxu1 %v1135_v2  ;;  %1034 = vmatprep.subr.bf16.mxu0 %v1138_v6 }
  0x3a   :  { %1062 = vmatprep.subr.bf16.mxu1 %v1139_v7 }
  0x3c   :  { %1035 = vmatpush3.bf16.msra.mxu0 %v1140_v8 }
  0x3d   :  { %1063 = vmatpush3.bf16.msra.mxu1 %v1141_v9  ;;  %1036 = vmatprep.subr.bf16.mxu0 %v1142_v10 }
  0x3e   :  { %1064 = vmatprep.subr.bf16.mxu1 %v1143_v11 }
  0x40   :  { %1037 = vmatpush3.bf16.msra.mxu0 %v1144_v12 }
  0x41   :  { %1065 = vmatpush3.bf16.msra.mxu1 %v1145_v13 }
  0x43   :  { %738 = vmatmul.mubr.bf16.vlgmr.msra.gmra.mrb[8].mxu0 %v879_v17 }
  0x44   :  { %786 = vmatmul.mubr.bf16.vlgmr.msra.gmra.mrb[8].mxu1 %v881_v22  ;;  %745 = vmatprep.mubr.bf16.mxu0 %v888_v24 }
  0x45   :  { %793 = vmatprep.mubr.bf16.mxu1 %v890_v25 }
  0x4b   :  { %746 = vmatmul.mubr.bf16.gmra.mrb[12].mxu0 %v887_v26 }
  0x4c   :  { %794 = vmatmul.mubr.bf16.gmra.mrb[12].mxu1 %v889_v27 }
  0xf6   :  { %v982_v28 = vpop.f32.mrb[0].mxu0 }
  0xf7   :  { %v1010_v29 = vpop.f32.mrb[0].mxu1  ;;  %v983_v30 = vpop.f32.mrb[1].mxu0 }
  0xf8   :  { %v984_v31 = vadd.f32 %v983_v30, %v982_v28  ;;  %v1011_v32 = vpop.f32.mrb[1].mxu1  ;;  %v985_v33 = vpop.f32.mrb[2].mxu0 }
  0xf9   :  { %v1012_v34 = vadd.f32 %v1011_v32, %v1010_v29  ;;  %v1013_v35 = vpop.f32.mrb[2].mxu1  ;;  %v986_v36 = vpop.f32.mrb[3].mxu0 }
  0xfa   :  { %v987_v37 = vadd.f32 %v986_v36, %v985_v33  ;;  %v1014_v38 = vpop.f32.mrb[3].mxu1 }
  0xfb   :  { %v692_v39 = vadd.f32 %v1012_v34, %v984_v31  ;;  %v1015_v40 = vadd.f32 %v1014_v38, %v1013_v35 }
  0xfd   :  { %v695_v41 = vadd.f32 %v1015_v40, %v987_v37 }
  0xfe   :  { %v988_v42 = vpop.f32.mrb[4].mxu0 }
  0xff   :  { %v989_v43 = vpop.f32.mrb[5].mxu0  ;;  %v1016_v47 = vpop.f32.mrb[4].mxu1 }
 0x100   :  { %v990_v44 = vadd.f32 %v989_v43, %v988_v42  ;;  %v991_v45 = vpop.f32.mrb[6].mxu0  ;;  %v1017_v48 = vpop.f32.mrb[5].mxu1 }
 0x101   :  { %v992_v46 = vpop.f32.mrb[7].mxu0  ;;  %v1018_v49 = vadd.f32 %v1017_v48, %v1016_v47  ;;  %v1019_v50 = vpop.f32.mrb[6].mxu1 }
 0x102   :  { %v1020_v51 = vpop.f32.mrb[7].mxu1 }
 0x103   :  { %v700_v52 = vadd.f32 %v1018_v49, %v990_v44 }
 0x116   :  { %v1038_v53 = vpop.f32.mrb[8].mxu0 }
 0x117   :  { %v1066_v54 = vpop.f32.mrb[8].mxu1  ;;  %v1039_v55 = vpop.f32.mrb[9].mxu0 }
 0x118   :  { %v1040_v56 = vadd.f32 %v1039_v55, %v1038_v53  ;;  %v1067_v57 = vpop.f32.mrb[9].mxu1  ;;  %v1041_v58 = vpop.f32.mrb[10].mxu0 }
 0x119   :  { %v1068_v59 = vadd.f32 %v1067_v57, %v1066_v54  ;;  %v1069_v60 = vpop.f32.mrb[10].mxu1  ;;  %v1042_v61 = vpop.f32.mrb[11].mxu0 }
 0x11a   :  { %v740_v62 = vadd.f32 %v1040_v56, %v692_v39  ;;  %v1043_v63 = vadd.f32 %v1042_v61, %v1041_v58  ;;  %v1070_v0 = vpop.f32.mrb[11].mxu1 }
 0x11b   :  { %v1071_v1 = vadd.f32 %v1070_v0, %v1069_v60 }
 0x11c   :  { %v788_v2 = vadd.f32 %v1068_v59, %v740_v62  ;;  %v743_v3 = vadd.f32 %v1043_v63, %v695_v41 }
 0x11e   :  { %v791_v4 = vadd.f32 %v1071_v1, %v743_v3  ;;  %v1044_v5 = vpop.f32.mrb[12].mxu0  ;;  %v810_v8 = vmul.f32 %v788_v2, %v788_v2 }
 0x11f   :  { %v1072_v6 = vpop.f32.mrb[12].mxu1  ;;  %v1045_v7 = vpop.f32.mrb[13].mxu0 }
 0x120   :  { %v801_v9 = vadd.f32 %v791_v4, %v788_v2  ;;  %v811_v10 = vmul.f32 %v791_v4, %v791_v4  ;;  %v1046_v11 = vadd.f32 %v1045_v7, %v1044_v5  ;;  %v1073_v12 = vpop.f32.mrb[13].mxu1  ;;  %v1047_v13 = vpop.f32.mrb[14].mxu0 }
 0x121   :  { %v1074_v14 = vadd.f32 %v1073_v12, %v1072_v6  ;;  %v1075_v15 = vpop.f32.mrb[14].mxu1  ;;  %v1048_v16 = vpop.f32.mrb[15].mxu0 }
 0x122   :  { %v813_v17 = vadd.f32 %v811_v10, %v810_v8  ;;  %v748_v18 = vadd.f32 %v1046_v11, %v700_v52  ;;  %v1076_v19 = vpop.f32.mrb[15].mxu1 }
 0x124   :  { %v796_v20 = vadd.f32 %v1074_v14, %v748_v18 }
 0x126   :  { %v802_v21 = vadd.f32 %v801_v9, %v796_v20  ;;  %v812_v22 = vmul.f32 %v796_v20, %v796_v20 }
 0x128   :  { %v803_v23 = vrot.slane %v802_v21, 4  ;;  %v814_v24 = vadd.f32 %v813_v17, %v812_v22 }
 0x12a   :  { %v804_v25 = vadd.f32 %v803_v23, %v802_v21  ;;  %v815_v26 = vrot.slane %v814_v24, 4 }
 0x12c   :  { %v805_v27 = vrot.slane %v804_v25, 2  ;;  %v816_v28 = vadd.f32 %v815_v26, %v814_v24 }
 0x12e   :  { %v806_v29 = vadd.f32 %v805_v27, %v804_v25  ;;  %v817_v30 = vrot.slane %v816_v28, 2 }
 0x130   :  { %v807_v31 = vrot.slane %v806_v29, 1  ;;  %v818_v32 = vadd.f32 %v817_v30, %v816_v28 }
 0x132   :  { %v808_v33 = vadd.f32 %v807_v31, %v806_v29  ;;  %v819_v34 = vrot.slane %v818_v32, 1 }
 0x134   :  { %v809_v35 = vmul.f32 0.055555556, %v808_v33  ;;  %v820_v36 = vadd.f32 %v819_v34, %v818_v32 }
 0x136   :  { %v821_v37 = vmul.f32 0.055555556, %v820_v36  ;;  %v822_v38 = vmul.f32 %v809_v35, %v809_v35  ;;  %v825_v39 = vsub.f32 %v788_v2, %v809_v35  ;;  %v826_v40 = vsub.f32 %v791_v4, %v809_v35 }
 0x137   :  { %v827_v41 = vsub.f32 %v796_v20, %v809_v35 }
 0x138   :  { %v823_v42 = vsub.f32 %v821_v37, %v822_v38 }
 0x13a   :  { %v824_v43 = vmax.f32 %v823_v42, 0.0 }
 0x13c   :  { %v828_v44 = vadd.f32 1e-05, %v824_v43 }
 0x13e   :  { %1150 = vrsqrt.f32 %v828_v44 }
 0x148   :  { %v1151_v45 = vpop.eup %1150 }
 0x149   :  { %v830_v46 = vmul.f32 %v1151_v45, %v825_v39  ;;  %v831_v47 = vmul.f32 %v1151_v45, %v826_v40  ;;  %v832_v48 = vmul.f32 %v1151_v45, %v827_v41 }
 0x14b   :  { %v836_v49 = vmul.f32 0.70710677, %v830_v46  ;;  %v837_v50 = vmul.f32 0.70710677, %v831_v47  ;;  %v838_v51 = vmul.f32 0.70710677, %v832_v48 }
 0x14c   :  { %v833_v54 = vmul.f32 0.5, %v830_v46  ;;  %v834_v57 = vmul.f32 0.5, %v831_v47  ;;  %v835_v59 = vmul.f32 0.5, %v832_v48 }
 0x14d   :  { %1152 = verf.f32 %v836_v49 }
 0x14e   :  { %1154 = verf.f32 %v837_v50 }
 0x14f   :  { %1156 = verf.f32 %v838_v51 }
 0x157   :  { %v1153_v52 = vpop.eup %1152 }
 0x158   :  { %v1155_v53 = vpop.eup %1154  ;;  %v842_v55 = vadd.f32 1.0, %v1153_v52 }
 0x159   :  { %v1157_v56 = vpop.eup %1156  ;;  %v843_v58 = vadd.f32 1.0, %v1155_v53 }
 0x15a   :  { %v844_v60 = vadd.f32 1.0, %v1157_v56  ;;  %v845_v61 = vmul.f32 %v842_v55, %v833_v54 }
 0x15b   :  { %v846_v62 = vmul.f32 %v843_v58, %v834_v57 }
 0x15c   :  { %v847_v63 = vmul.f32 %v844_v60, %v835_v59  ;;  %848 = vst [vmem:[%s1429_s3] sm:$0xff] %v845_v61 }
 0x15d   :  { %849 = vst [vmem:[%s1429_s3 + $0x8] sm:$0xff] %v846_v62  ;;  %v964_v0 = vpack.c.bf16 %v846_v62, %v845_v61 }
 0x15e   :  { %850 = vst [vmem:[%s1429_s3 + $0x10] sm:$0xff] %v847_v63  ;;  %v960_v1 = vpack.c.bf16 %v847_v63, %v847_v63 }
 0x15f   :  { %965 = vst [vmem:[%s1430_s4] sm:$0xff] %v964_v0  }
 0x160   :  { %866 = vst [vmem:[%s1430_s4 + $0x8] sm:$0xf] %v960_v1 }

// kernel: forward.9
= control target key start
LH: loop header
LB: loop body
LE: loop exit
PB: predicated region body
PF: predicated region fallthrough
CT: control target
= control target key end

     0   :  { %s2396_s0 = inlined_call_operand.vmem [shape: bf16[8,2048], index: 0, kind: input, shape index: {}]   ;;  %s2397_s1 = inlined_call_operand.vmem [shape: bf16[2048,128], index: 1, kind: input, shape index: {}]   ;;  %s2398_s2 = inlined_call_operand.vmem [shape: f32[1,128], index: 2, kind: input, shape index: {}]   ;;  %s2399_s3 = inlined_call_operand.vmem [shape: f32[8,128], index: 3, kind: output, shape index: {0}]   ;;  %s2400_s4 = inlined_call_operand.hbm [shape: bf16[8,128], index: 4, kind: output, shape index: {1}]  }
   0x1   :  { %v1776_v0 = vld [vmem:[%s2397_s1 + $0x40] sm:$0xff]   ;;  %v1780_v4 = vld [vmem:[%s2397_s1 + $0x48] sm:$0xff]   ;;  %v1784_v8 = vld [vmem:[%s2397_s1 + $0x50] sm:$0xff]  }
   0x2   :  { %v1777_v1 = vld [vmem:[%s2397_s1 + $0xc0] sm:$0xff]   ;;  %1599 = vmatprep.subr.bf16.mxu0 %v1776_v0  ;;  %v1781_v5 = vld [vmem:[%s2397_s1 + $0xc8] sm:$0xff]   ;;  %v1785_v9 = vld [vmem:[%s2397_s1 + $0xd0] sm:$0xff]  }
   0x3   :  { %v1778_v2 = vld [vmem:[%s2397_s1] sm:$0xff]   ;;  %1621 = vmatprep.subr.bf16.mxu1 %v1777_v1  ;;  %v1782_v6 = vld [vmem:[%s2397_s1 + $0x8] sm:$0xff]   ;;  %v1786_v10 = vld [vmem:[%s2397_s1 + $0x10] sm:$0xff]  }
   0x4   :  { %v1779_v3 = vld [vmem:[%s2397_s1 + $0x80] sm:$0xff]   ;;  %1600 = vmatpush3.bf16.msra.mxu0 %v1778_v2  ;;  %v1783_v7 = vld [vmem:[%s2397_s1 + $0x88] sm:$0xff]   ;;  %v1787_v11 = vld [vmem:[%s2397_s1 + $0x90] sm:$0xff]  }
   0x5   :  { %1622 = vmatpush3.bf16.msra.mxu1 %v1779_v3  ;;  %1601 = vmatprep.subr.bf16.mxu0 %v1780_v4  ;;  %v1788_v12 = vld [vmem:[%s2397_s1 + $0x58] sm:$0xff]   ;;  %v1792_v16 = vld [vmem:[%s2397_s1 + $0x60] sm:$0xff]   ;;  %v1796_v20 = vld [vmem:[%s2397_s1 + $0x68] sm:$0xff]  }
   0x6   :  { %1623 = vmatprep.subr.bf16.mxu1 %v1781_v5  ;;  %v1789_v13 = vld [vmem:[%s2397_s1 + $0xd8] sm:$0xff]   ;;  %v1793_v17 = vld [vmem:[%s2397_s1 + $0xe0] sm:$0xff]   ;;  %v1797_v21 = vld [vmem:[%s2397_s1 + $0xe8] sm:$0xff]  }
   0x7   :  { %v1790_v14 = vld [vmem:[%s2397_s1 + $0x18] sm:$0xff]   ;;  %v1794_v18 = vld [vmem:[%s2397_s1 + $0x20] sm:$0xff]   ;;  %v1798_v22 = vld [vmem:[%s2397_s1 + $0x28] sm:$0xff]  }
   0x8   :  { %1602 = vmatpush3.bf16.msra.mxu0 %v1782_v6  ;;  %v1791_v15 = vld [vmem:[%s2397_s1 + $0x98] sm:$0xff]   ;;  %v1795_v19 = vld [vmem:[%s2397_s1 + $0xa0] sm:$0xff]   ;;  %v1799_v23 = vld [vmem:[%s2397_s1 + $0xa8] sm:$0xff]  }
   0x9   :  { %1624 = vmatpush3.bf16.msra.mxu1 %v1783_v7  ;;  %1603 = vmatprep.subr.bf16.mxu0 %v1784_v8  ;;  %v1800_v24 = vld [vmem:[%s2397_s1 + $0x70] sm:$0xff]   ;;  %v1804_v28 = vld [vmem:[%s2397_s1 + $0x78] sm:$0xff]   ;;  %v18_v32 = vld [vmem:[%s2396_s0] sm:$0xff] }
   0xa   :  { %1625 = vmatprep.subr.bf16.mxu1 %v1785_v9  ;;  %v1801_v25 = vld [vmem:[%s2397_s1 + $0xf0] sm:$0xff]   ;;  %v1805_v29 = vld [vmem:[%s2397_s1 + $0xf8] sm:$0xff]   ;;  %v19_v33 = vld [vmem:[%s2396_s0 + $0x8] sm:$0xff]  ;;  %v1455_v34 = vcombine.low %v18_v32, %v18_v32  ;;  %v1456_v35 = vcombine.high %v18_v32, %v18_v32 }
   0xb   :  { %v1802_v26 = vld [vmem:[%s2397_s1 + $0x30] sm:$0xff]   ;;  %v1806_v30 = vld [vmem:[%s2397_s1 + $0x38] sm:$0xff]   ;;  %v1457_v36 = vcombine.low %v19_v33, %v19_v33  ;;  %v1458_v37 = vcombine.high %v19_v33, %v19_v33  ;;  %v1812_v38 = vld [vmem:[%s2397_s1 + $0x140] sm:$0xff]  }
   0xc   :  { %1604 = vmatpush3.bf16.msra.mxu0 %v1786_v10  ;;  %v1803_v27 = vld [vmem:[%s2397_s1 + $0xb0] sm:$0xff]   ;;  %v1807_v31 = vld [vmem:[%s2397_s1 + $0xb8] sm:$0xff]   ;;  %v1813_v39 = vld [vmem:[%s2397_s1 + $0x1c0] sm:$0xff]   ;;  %1145 = vmatprep.mubr.bf16.mxu0 %v1456_v35 }
   0xd   :  { %1626 = vmatpush3.bf16.msra.mxu1 %v1787_v11  ;;  %1605 = vmatprep.subr.bf16.mxu0 %v1788_v12  ;;  %v1814_v40 = vld [vmem:[%s2397_s1 + $0x100] sm:$0xff]   ;;  %v1816_v42 = vld [vmem:[%s2397_s1 + $0x148] sm:$0xff]   ;;  %v1820_v46 = vld [vmem:[%s2397_s1 + $0x150] sm:$0xff]  }
   0xe   :  { %1627 = vmatprep.subr.bf16.mxu1 %v1789_v13  ;;  %1185 = vmatprep.mubr.bf16.mxu1 %v1458_v37  ;;  %v1815_v41 = vld [vmem:[%s2397_s1 + $0x180] sm:$0xff]   ;;  %v1817_v43 = vld [vmem:[%s2397_s1 + $0x1c8] sm:$0xff]   ;;  %v1821_v47 = vld [vmem:[%s2397_s1 + $0x1d0] sm:$0xff]  }
   0xf   :  { %v1818_v44 = vld [vmem:[%s2397_s1 + $0x108] sm:$0xff]   ;;  %v1822_v48 = vld [vmem:[%s2397_s1 + $0x110] sm:$0xff]   ;;  %v1824_v50 = vld [vmem:[%s2397_s1 + $0x158] sm:$0xff]  }
  0x10   :  { %1606 = vmatpush3.bf16.msra.mxu0 %v1790_v14  ;;  %v1819_v45 = vld [vmem:[%s2397_s1 + $0x188] sm:$0xff]   ;;  %v1823_v49 = vld [vmem:[%s2397_s1 + $0x190] sm:$0xff]   ;;  %v1825_v51 = vld [vmem:[%s2397_s1 + $0x1d8] sm:$0xff]  }
  0x11   :  { %1628 = vmatpush3.bf16.msra.mxu1 %v1791_v15  ;;  %1607 = vmatprep.subr.bf16.mxu0 %v1792_v16  ;;  %v1826_v52 = vld [vmem:[%s2397_s1 + $0x118] sm:$0xff]   ;;  %v1828_v54 = vld [vmem:[%s2397_s1 + $0x160] sm:$0xff]   ;;  %v1832_v58 = vld [vmem:[%s2397_s1 + $0x168] sm:$0xff]  }
  0x12   :  { %1629 = vmatprep.subr.bf16.mxu1 %v1793_v17  ;;  %v1827_v53 = vld [vmem:[%s2397_s1 + $0x198] sm:$0xff]   ;;  %v1829_v55 = vld [vmem:[%s2397_s1 + $0x1e0] sm:$0xff]   ;;  %v1833_v59 = vld [vmem:[%s2397_s1 + $0x1e8] sm:$0xff]  }
  0x13   :  { %v1830_v56 = vld [vmem:[%s2397_s1 + $0x120] sm:$0xff]   ;;  %v1834_v60 = vld [vmem:[%s2397_s1 + $0x128] sm:$0xff]   ;;  %v1836_v62 = vld [vmem:[%s2397_s1 + $0x170] sm:$0xff]  }
  0x14   :  { %1608 = vmatpush3.bf16.msra.mxu0 %v1794_v18  ;;  %v1831_v57 = vld [vmem:[%s2397_s1 + $0x1a0] sm:$0xff]   ;;  %v1835_v61 = vld [vmem:[%s2397_s1 + $0x1a8] sm:$0xff]   ;;  %v1837_v63 = vld [vmem:[%s2397_s1 + $0x1f0] sm:$0xff]  }
  0x15   :  { %1630 = vmatpush3.bf16.msra.mxu1 %v1795_v19  ;;  %1609 = vmatprep.subr.bf16.mxu0 %v1796_v20  ;;  %v1838_v0 = vld [vmem:[%s2397_s1 + $0x130] sm:$0xff]   ;;  %v1840_v2 = vld [vmem:[%s2397_s1 + $0x178] sm:$0xff]   ;;  %v1848_v12 = vld [vmem:[%s2397_s1 + $0x240] sm:$0xff]  }
  0x16   :  { %1631 = vmatprep.subr.bf16.mxu1 %v1797_v21  ;;  %v1839_v1 = vld [vmem:[%s2397_s1 + $0x1b0] sm:$0xff]   ;;  %v1841_v3 = vld [vmem:[%s2397_s1 + $0x1f8] sm:$0xff]   ;;  %v1849_v13 = vld [vmem:[%s2397_s1 + $0x2c0] sm:$0xff]  }
  0x17   :  { %v1842_v4 = vld [vmem:[%s2397_s1 + $0x138] sm:$0xff]   ;;  %v20_v6 = vld [vmem:[%s2396_s0 + $0x10] sm:$0xff]  ;;  %v1850_v14 = vld [vmem:[%s2397_s1 + $0x200] sm:$0xff]  }
  0x18   :  { %1610 = vmatpush3.bf16.msra.mxu0 %v1798_v22  ;;  %v1843_v5 = vld [vmem:[%s2397_s1 + $0x1b8] sm:$0xff]   ;;  %v1459_v7 = vcombine.low %v20_v6, %v20_v6  ;;  %v1460_v8 = vcombine.high %v20_v6, %v20_v6  ;;  %v1851_v15 = vld [vmem:[%s2397_s1 + $0x280] sm:$0xff]   ;;  %v1852_v16 = vld [vmem:[%s2397_s1 + $0x248] sm:$0xff]  }
  0x19   :  { %1632 = vmatpush3.bf16.msra.mxu1 %v1799_v23  ;;  %1611 = vmatprep.subr.bf16.mxu0 %v1800_v24  ;;  %v21_v9 = vld [vmem:[%s2396_s0 + $0x18] sm:$0xff]  ;;  %v1853_v17 = vld [vmem:[%s2397_s1 + $0x2c8] sm:$0xff]   ;;  %v1856_v20 = vld [vmem:[%s2397_s1 + $0x250] sm:$0xff]  }
  0x1a   :  { %1633 = vmatprep.subr.bf16.mxu1 %v1801_v25  ;;  %v1461_v10 = vcombine.low %v21_v9, %v21_v9  ;;  %v1462_v11 = vcombine.high %v21_v9, %v21_v9  ;;  %v1854_v18 = vld [vmem:[%s2397_s1 + $0x208] sm:$0xff]   ;;  %v1857_v21 = vld [vmem:[%s2397_s1 + $0x2d0] sm:$0xff]   ;;  %v1860_v24 = vld [vmem:[%s2397_s1 + $0x258] sm:$0xff]  }
  0x1b   :  { %v1855_v19 = vld [vmem:[%s2397_s1 + $0x288] sm:$0xff]   ;;  %v1858_v22 = vld [vmem:[%s2397_s1 + $0x210] sm:$0xff]   ;;  %v1861_v25 = vld [vmem:[%s2397_s1 + $0x2d8] sm:$0xff]  }
  0x1c   :  { %1612 = vmatpush3.bf16.msra.mxu0 %v1802_v26  ;;  %v1859_v23 = vld [vmem:[%s2397_s1 + $0x290] sm:$0xff]   ;;  %v1862_v26 = vld [vmem:[%s2397_s1 + $0x218] sm:$0xff]   ;;  %v1868_v32 = vld [vmem:[%s2397_s1 + $0x268] sm:$0xff]  }
  0x1d   :  { %1634 = vmatpush3.bf16.msra.mxu1 %v1803_v27  ;;  %1613 = vmatprep.subr.bf16.mxu0 %v1804_v28  ;;  %v1863_v27 = vld [vmem:[%s2397_s1 + $0x298] sm:$0xff]   ;;  %v1864_v28 = vld [vmem:[%s2397_s1 + $0x260] sm:$0xff]   ;;  %v1869_v33 = vld [vmem:[%s2397_s1 + $0x2e8] sm:$0xff]  }
  0x1e   :  { %1635 = vmatprep.subr.bf16.mxu1 %v1805_v29  ;;  %v1865_v29 = vld [vmem:[%s2397_s1 + $0x2e0] sm:$0xff]   ;;  %v1871_v35 = vld [vmem:[%s2397_s1 + $0x2a8] sm:$0xff]   ;;  %v1873_v37 = vld [vmem:[%s2397_s1 + $0x2f0] sm:$0xff]  }
  0x1f   :  { %v1904_v6 = vld [vmem:[%s2397_s1 + $0x368] sm:$0xff]  }
  0x20   :  { %1614 = vmatpush3.bf16.msra.mxu0 %v1806_v30  ;;  %v1866_v30 = vld [vmem:[%s2397_s1 + $0x220] sm:$0xff]   ;;  %v1907_v9 = vld [vmem:[%s2397_s1 + $0x3a8] sm:$0xff]  }
  0x21   :  { %1636 = vmatpush3.bf16.msra.mxu1 %v1807_v31  ;;  %1643 = vmatprep.subr.bf16.mxu0 %v1812_v38  ;;  %v1867_v31 = vld [vmem:[%s2397_s1 + $0x2a0] sm:$0xff]   ;;  %v1874_v38 = vld [vmem:[%s2397_s1 + $0x230] sm:$0xff]  }
  0x22   :  { %1665 = vmatprep.subr.bf16.mxu1 %v1813_v39  ;;  %v1875_v39 = vld [vmem:[%s2397_s1 + $0x2b0] sm:$0xff]  }
  0x23   :  { %1146 = vmatmul.mubr.bf16.vlgmr.msra.gmra.mrb[0].mxu0 %v1455_v34  ;;  %v1870_v34 = vld [vmem:[%s2397_s1 + $0x228] sm:$0xff]  }
  0x24   :  { %1186 = vmatmul.mubr.bf16.vlgmr.msra.gmra.mrb[0].mxu1 %v1457_v36  ;;  %1644 = vmatpush3.bf16.msra.mxu0 %v1814_v40  ;;  %v1872_v36 = vld [vmem:[%s2397_s1 + $0x270] sm:$0xff]   ;;  %v1876_v40 = vld [vmem:[%s2397_s1 + $0x278] sm:$0xff]  }
  0x25   :  { %1666 = vmatpush3.bf16.msra.mxu1 %v1815_v41  ;;  %1645 = vmatprep.subr.bf16.mxu0 %v1816_v42  ;;  %v1877_v41 = vld [vmem:[%s2397_s1 + $0x2f8] sm:$0xff]  }
  0x26   :  { %1667 = vmatprep.subr.bf16.mxu1 %v1817_v43  ;;  %1225 = vmatprep.mubr.bf16.mxu0 %v1460_v8  ;;  %v1878_v42 = vld [vmem:[%s2397_s1 + $0x238] sm:$0xff]   ;;  %v1906_v8 = vld [vmem:[%s2397_s1 + $0x328] sm:$0xff]  }
  0x27   :  { %1265 = vmatprep.mubr.bf16.mxu1 %v1462_v11  ;;  %v1879_v43 = vld [vmem:[%s2397_s1 + $0x2b8] sm:$0xff]   ;;  %v1909_v11 = vld [vmem:[%s2397_s1 + $0x3f0] sm:$0xff]  }
  0x28   :  { %1646 = vmatpush3.bf16.msra.mxu0 %v1818_v44  ;;  %v22_v44 = vld [vmem:[%s2396_s0 + $0x20] sm:$0xff] }
  0x29   :  { %1668 = vmatpush3.bf16.msra.mxu1 %v1819_v45  ;;  %1647 = vmatprep.subr.bf16.mxu0 %v1820_v46  ;;  %v23_v45 = vld [vmem:[%s2396_s0 + $0x28] sm:$0xff]  ;;  %v1463_v46 = vcombine.low %v22_v44, %v22_v44 }
  0x2a   :  { %1669 = vmatprep.subr.bf16.mxu1 %v1821_v47  ;;  %v1464_v47 = vcombine.high %v22_v44, %v22_v44 }
  0x2c   :  { %1648 = vmatpush3.bf16.msra.mxu0 %v1822_v48  ;;  %v1465_v48 = vcombine.low %v23_v45, %v23_v45 }
  0x2d   :  { %1670 = vmatpush3.bf16.msra.mxu1 %v1823_v49  ;;  %1649 = vmatprep.subr.bf16.mxu0 %v1824_v50  ;;  %v1466_v49 = vcombine.high %v23_v45, %v23_v45  ;;  %v1884_v50 = vld [vmem:[%s2397_s1 + $0x340] sm:$0xff]  }
  0x2e   :  { %1671 = vmatprep.subr.bf16.mxu1 %v1825_v51  ;;  %v1885_v51 = vld [vmem:[%s2397_s1 + $0x3c0] sm:$0xff]  }
  0x30   :  { %1650 = vmatpush3.bf16.msra.mxu0 %v1826_v52  ;;  %v1886_v52 = vld [vmem:[%s2397_s1 + $0x300] sm:$0xff]  }
  0x31   :  { %1672 = vmatpush3.bf16.msra.mxu1 %v1827_v53  ;;  %1651 = vmatprep.subr.bf16.mxu0 %v1828_v54  ;;  %v1887_v53 = vld [vmem:[%s2397_s1 + $0x380] sm:$0xff]   ;;  %v1888_v54 = vld [vmem:[%s2397_s1 + $0x348] sm:$0xff]  }
  0x32   :  { %1673 = vmatprep.subr.bf16.mxu1 %v1829_v55  ;;  %v1889_v55 = vld [vmem:[%s2397_s1 + $0x3c8] sm:$0xff]  }
  0x34   :  { %1652 = vmatpush3.bf16.msra.mxu0 %v1830_v56  ;;  %v1890_v56 = vld [vmem:[%s2397_s1 + $0x308] sm:$0xff]  }
  0x35   :  { %1674 = vmatpush3.bf16.msra.mxu1 %v1831_v57  ;;  %1653 = vmatprep.subr.bf16.mxu0 %v1832_v58  ;;  %v1891_v57 = vld [vmem:[%s2397_s1 + $0x388] sm:$0xff]   ;;  %v1892_v58 = vld [vmem:[%s2397_s1 + $0x350] sm:$0xff]  }
  0x36   :  { %1675 = vmatprep.subr.bf16.mxu1 %v1833_v59  ;;  %v1893_v59 = vld [vmem:[%s2397_s1 + $0x3d0] sm:$0xff]  }
  0x38   :  { %1654 = vmatpush3.bf16.msra.mxu0 %v1834_v60  ;;  %v1894_v60 = vld [vmem:[%s2397_s1 + $0x310] sm:$0xff]  }
  0x39   :  { %1676 = vmatpush3.bf16.msra.mxu1 %v1835_v61  ;;  %1655 = vmatprep.subr.bf16.mxu0 %v1836_v62  ;;  %v1895_v61 = vld [vmem:[%s2397_s1 + $0x390] sm:$0xff]   ;;  %v1896_v62 = vld [vmem:[%s2397_s1 + $0x358] sm:$0xff]  }
  0x3a   :  { %1677 = vmatprep.subr.bf16.mxu1 %v1837_v63  ;;  %v1897_v63 = vld [vmem:[%s2397_s1 + $0x3d8] sm:$0xff]  }
  0x3c   :  { %1656 = vmatpush3.bf16.msra.mxu0 %v1838_v0  ;;  %v1898_v0 = vld [vmem:[%s2397_s1 + $0x318] sm:$0xff]  }
  0x3d   :  { %1678 = vmatpush3.bf16.msra.mxu1 %v1839_v1  ;;  %1657 = vmatprep.subr.bf16.mxu0 %v1840_v2  ;;  %v1899_v1 = vld [vmem:[%s2397_s1 + $0x398] sm:$0xff]   ;;  %v1900_v2 = vld [vmem:[%s2397_s1 + $0x360] sm:$0xff]  }
  0x3e   :  { %1679 = vmatprep.subr.bf16.mxu1 %v1841_v3  ;;  %v1901_v3 = vld [vmem:[%s2397_s1 + $0x3e0] sm:$0xff]  }
  0x40   :  { %1658 = vmatpush3.bf16.msra.mxu0 %v1842_v4  ;;  %v1902_v4 = vld [vmem:[%s2397_s1 + $0x320] sm:$0xff]  }
  0x41   :  { %1680 = vmatpush3.bf16.msra.mxu1 %v1843_v5  ;;  %1687 = vmatprep.subr.bf16.mxu0 %v1848_v12  ;;  %v1903_v5 = vld [vmem:[%s2397_s1 + $0x3a0] sm:$0xff]   ;;  %v1910_v12 = vld [vmem:[%s2397_s1 + $0x330] sm:$0xff]  }
  0x42   :  { %1709 = vmatprep.subr.bf16.mxu1 %v1849_v13  ;;  %v1911_v13 = vld [vmem:[%s2397_s1 + $0x3b0] sm:$0xff]  }
  0x43   :  { %1226 = vmatmul.mubr.bf16.vlgmr.msra.gmra.mrb[4].mxu0 %v1459_v7  ;;  %v1905_v7 = vld [vmem:[%s2397_s1 + $0x3e8] sm:$0xff]  }
  0x44   :  { %1266 = vmatmul.mubr.bf16.vlgmr.msra.gmra.mrb[4].mxu1 %v1461_v10  ;;  %1688 = vmatpush3.bf16.msra.mxu0 %v1850_v14  ;;  %v1908_v10 = vld [vmem:[%s2397_s1 + $0x370] sm:$0xff]   ;;  %v1912_v14 = vld [vmem:[%s2397_s1 + $0x378] sm:$0xff]  }
  0x45   :  { %1710 = vmatpush3.bf16.msra.mxu1 %v1851_v15  ;;  %1689 = vmatprep.subr.bf16.mxu0 %v1852_v16  ;;  %v1913_v15 = vld [vmem:[%s2397_s1 + $0x3f8] sm:$0xff]  }
  0x46   :  { %1711 = vmatprep.subr.bf16.mxu1 %v1853_v17  ;;  %1305 = vmatprep.mubr.bf16.mxu0 %v1464_v47  ;;  %v1914_v16 = vld [vmem:[%s2397_s1 + $0x338] sm:$0xff]  }
  0x47   :  { %1345 = vmatprep.mubr.bf16.mxu1 %v1466_v49  ;;  %v1915_v17 = vld [vmem:[%s2397_s1 + $0x3b8] sm:$0xff]  }
  0x48   :  { %1690 = vmatpush3.bf16.msra.mxu0 %v1854_v18  ;;  %v24_v18 = vld [vmem:[%s2396_s0 + $0x30] sm:$0xff] }
  0x49   :  { %1712 = vmatpush3.bf16.msra.mxu1 %v1855_v19  ;;  %1691 = vmatprep.subr.bf16.mxu0 %v1856_v20  ;;  %v25_v19 = vld [vmem:[%s2396_s0 + $0x38] sm:$0xff]  ;;  %v1467_v20 = vcombine.low %v24_v18, %v24_v18 }
  0x4a   :  { %1713 = vmatprep.subr.bf16.mxu1 %v1857_v21  ;;  %v1468_v21 = vcombine.high %v24_v18, %v24_v18 }
  0x4c   :  { %1692 = vmatpush3.bf16.msra.mxu0 %v1858_v22  ;;  %v1469_v22 = vcombine.low %v25_v19, %v25_v19 }
  0x4d   :  { %1714 = vmatpush3.bf16.msra.mxu1 %v1859_v23  ;;  %1693 = vmatprep.subr.bf16.mxu0 %v1860_v24 }
  0x4e   :  { %1715 = vmatprep.subr.bf16.mxu1 %v1861_v25 }
  0x50   :  { %1694 = vmatpush3.bf16.msra.mxu0 %v1862_v26 }
  0x51   :  { %1716 = vmatpush3.bf16.msra.mxu1 %v1863_v27  ;;  %1695 = vmatprep.subr.bf16.mxu0 %v1864_v28 }
  0x52   :  { %1717 = vmatprep.subr.bf16.mxu1 %v1865_v29 }
  0x54   :  { %1696 = vmatpush3.bf16.msra.mxu0 %v1866_v30 }
  0x55   :  { %1718 = vmatpush3.bf16.msra.mxu1 %v1867_v31  ;;  %1697 = vmatprep.subr.bf16.mxu0 %v1868_v32 }
  0x56   :  { %1719 = vmatprep.subr.bf16.mxu1 %v1869_v33 }
  0x58   :  { %1698 = vmatpush3.bf16.msra.mxu0 %v1870_v34 }
  0x59   :  { %1720 = vmatpush3.bf16.msra.mxu1 %v1871_v35  ;;  %1699 = vmatprep.subr.bf16.mxu0 %v1872_v36 }
  0x5a   :  { %1721 = vmatprep.subr.bf16.mxu1 %v1873_v37 }
  0x5c   :  { %1700 = vmatpush3.bf16.msra.mxu0 %v1874_v38 }
  0x5d   :  { %1722 = vmatpush3.bf16.msra.mxu1 %v1875_v39  ;;  %1701 = vmatprep.subr.bf16.mxu0 %v1876_v40 }
  0x5e   :  { %1723 = vmatprep.subr.bf16.mxu1 %v1877_v41 }
  0x60   :  { %1702 = vmatpush3.bf16.msra.mxu0 %v1878_v42 }
  0x61   :  { %1724 = vmatpush3.bf16.msra.mxu1 %v1879_v43  ;;  %1731 = vmatprep.subr.bf16.mxu0 %v1884_v50 }
  0x62   :  { %1753 = vmatprep.subr.bf16.mxu1 %v1885_v51 }
  0x63   :  { %1306 = vmatmul.mubr.bf16.vlgmr.msra.gmra.mrb[8].mxu0 %v1463_v46 }
  0x64   :  { %1346 = vmatmul.mubr.bf16.vlgmr.msra.gmra.mrb[8].mxu1 %v1465_v48  ;;  %1732 = vmatpush3.bf16.msra.mxu0 %v1886_v52 }
  0x65   :  { %1754 = vmatpush3.bf16.msra.mxu1 %v1887_v53  ;;  %1733 = vmatprep.subr.bf16.mxu0 %v1888_v54 }
  0x66   :  { %1755 = vmatprep.subr.bf16.mxu1 %v1889_v55 }
  0x68   :  { %1734 = vmatpush3.bf16.msra.mxu0 %v1890_v56 }
  0x69   :  { %1756 = vmatpush3.bf16.msra.mxu1 %v1891_v57  ;;  %1735 = vmatprep.subr.bf16.mxu0 %v1892_v58 }
  0x6a   :  { %1757 = vmatprep.subr.bf16.mxu1 %v1893_v59 }
  0x6c   :  { %1736 = vmatpush3.bf16.msra.mxu0 %v1894_v60 }
  0x6d   :  { %1758 = vmatpush3.bf16.msra.mxu1 %v1895_v61  ;;  %1737 = vmatprep.subr.bf16.mxu0 %v1896_v62 }
  0x6e   :  { %1759 = vmatprep.subr.bf16.mxu1 %v1897_v63 }
  0x70   :  { %1738 = vmatpush3.bf16.msra.mxu0 %v1898_v0 }
  0x71   :  { %1760 = vmatpush3.bf16.msra.mxu1 %v1899_v1  ;;  %1739 = vmatprep.subr.bf16.mxu0 %v1900_v2 }
  0x72   :  { %1761 = vmatprep.subr.bf16.mxu1 %v1901_v3 }
  0x74   :  { %1740 = vmatpush3.bf16.msra.mxu0 %v1902_v4 }
  0x75   :  { %1762 = vmatpush3.bf16.msra.mxu1 %v1903_v5  ;;  %1741 = vmatprep.subr.bf16.mxu0 %v1904_v6 }
  0x76   :  { %1763 = vmatprep.subr.bf16.mxu1 %v1905_v7 }
  0x78   :  { %1742 = vmatpush3.bf16.msra.mxu0 %v1906_v8 }
  0x79   :  { %1764 = vmatpush3.bf16.msra.mxu1 %v1907_v9  ;;  %1743 = vmatprep.subr.bf16.mxu0 %v1908_v10 }
  0x7a   :  { %1765 = vmatprep.subr.bf16.mxu1 %v1909_v11 }
  0x7c   :  { %1744 = vmatpush3.bf16.msra.mxu0 %v1910_v12 }
  0x7d   :  { %1766 = vmatpush3.bf16.msra.mxu1 %v1911_v13  ;;  %1745 = vmatprep.subr.bf16.mxu0 %v1912_v14 }
  0x7e   :  { %1767 = vmatprep.subr.bf16.mxu1 %v1913_v15 }
  0x80   :  { %1746 = vmatpush3.bf16.msra.mxu0 %v1914_v16 }
  0x81   :  { %1768 = vmatpush3.bf16.msra.mxu1 %v1915_v17 }
  0x82   :  { %10 = vsyncpa [#allocation3], 0  ;;  %v1470_v23 = vcombine.high %v25_v19, %v25_v19  ;;  %1385 = vmatprep.mubr.bf16.mxu0 %v1468_v21  ;;  %v1454_v26 = vld [vmem:[%s2398_s2] ss:$0 sm:$0xff]  ;;  %s1944_s0 = smov [#allocation2]  }
  0x83   :  { %1386 = vmatmul.mubr.bf16.vlgmr.msra.gmra.mrb[12].mxu0 %v1467_v20  ;;  %s1444_s2 = sshll.u32 %s1944_s0, 4  ;;  %s1445_s2 = int_to_ptr.vmem [resolvable:$true] %s1444_s2 }
  0x84   :  { %1425 = vmatprep.mubr.bf16.mxu1 %v1470_v23  ;;  %s1920_s30 = scalar_lea.vmem %s1445_s2, 64  ;;  %p1925_p1 = scmp.lt.s32.totalorder %s1445_s2, %s1445_s2 }
  0x85   :  { %1426 = vmatmul.mubr.bf16.vlgmr.msra.gmra.mrb[12].mxu1 %v1469_v22  ;;  %p1921_p0 = scmp.ne.s32.totalorder %s1445_s2, %s1920_s30  ;;  %p1926_p2 = scmp.lt.s32.totalorder %s1920_s30, %s1920_s30 }
  0x87   :  { %p1927_p3 = por %p1926_p2, %p1925_p1 }
  0x89   :  { %p1928_p4 = pnand %p1927_p3, %p1921_p0 }
  0xf6   :  { %v1615_v24 = vpop.f32.mrb[0].mxu0 }
  0xf7   :  { %v1637_v25 = vpop.f32.mrb[0].mxu1  ;;  %v1616_v27 = vpop.f32.mrb[1].mxu0 }
  0xf8   :  { %v1638_v28 = vpop.f32.mrb[1].mxu1  ;;  %v1617_v29 = vadd.f32 %v1616_v27, %v1615_v24  ;;  %v1618_v31 = vpop.f32.mrb[2].mxu0 }
  0xf9   :  { %v1639_v30 = vadd.f32 %v1638_v28, %v1637_v25  ;;  %v1640_v32 = vpop.f32.mrb[2].mxu1  ;;  %v1619_v33 = vpop.f32.mrb[3].mxu0 }
  0xfa   :  { %v1641_v34 = vpop.f32.mrb[3].mxu1  ;;  %v1148_v35 = vadd.f32 %v1617_v29, %v1454_v26 }
  0xfc   :  { %v1188_v36 = vadd.f32 %v1639_v30, %v1148_v35 }
 0x116   :  { %v1659_v37 = vpop.f32.mrb[4].mxu0 }
 0x117   :  { %v1681_v38 = vpop.f32.mrb[4].mxu1  ;;  %v1660_v39 = vpop.f32.mrb[5].mxu0 }
 0x118   :  { %v1682_v40 = vpop.f32.mrb[5].mxu1  ;;  %v1661_v41 = vadd.f32 %v1660_v39, %v1659_v37  ;;  %v1662_v43 = vpop.f32.mrb[6].mxu0 }
 0x119   :  { %v1683_v42 = vadd.f32 %v1682_v40, %v1681_v38  ;;  %v1684_v44 = vpop.f32.mrb[6].mxu1  ;;  %v1663_v45 = vpop.f32.mrb[7].mxu0 }
 0x11a   :  { %v1685_v46 = vpop.f32.mrb[7].mxu1  ;;  %v1228_v47 = vadd.f32 %v1661_v41, %v1188_v36 }
 0x11c   :  { %v1268_v48 = vadd.f32 %v1683_v42, %v1228_v47 }
 0x136   :  { %v1703_v49 = vpop.f32.mrb[8].mxu0 }
 0x137   :  { %v1725_v50 = vpop.f32.mrb[8].mxu1  ;;  %v1704_v51 = vpop.f32.mrb[9].mxu0 }
 0x138   :  { %v1705_v52 = vadd.f32 %v1704_v51, %v1703_v49  ;;  %v1726_v53 = vpop.f32.mrb[9].mxu1  ;;  %v1706_v54 = vpop.f32.mrb[10].mxu0 }
 0x139   :  { %v1727_v55 = vadd.f32 %v1726_v53, %v1725_v50  ;;  %v1728_v56 = vpop.f32.mrb[10].mxu1  ;;  %v1707_v57 = vpop.f32.mrb[11].mxu0 }
 0x13a   :  { %v1308_v58 = vadd.f32 %v1705_v52, %v1268_v48  ;;  %v1729_v59 = vpop.f32.mrb[11].mxu1 }
 0x13c   :  { %v1348_v60 = vadd.f32 %v1727_v55, %v1308_v58 }
 0x156   :  { %v1747_v61 = vpop.f32.mrb[12].mxu0 }
 0x157   :  { %v1748_v63 = vpop.f32.mrb[13].mxu0 }
 0x158   :  { %v1769_v62 = vpop.f32.mrb[12].mxu1  ;;  %v1749_v0 = vadd.f32 %v1748_v63, %v1747_v61  ;;  %v1750_v2 = vpop.f32.mrb[14].mxu0 }
 0x159   :  { %v1770_v1 = vpop.f32.mrb[13].mxu1  ;;  %v1751_v5 = vpop.f32.mrb[15].mxu0 }
 0x15a   :  { %v1771_v3 = vadd.f32 %v1770_v1, %v1769_v62  ;;  %v1772_v4 = vpop.f32.mrb[14].mxu1  ;;  %v1388_v6 = vadd.f32 %v1749_v0, %v1348_v60 }
 0x15b   :  { %v1773_v7 = vpop.f32.mrb[15].mxu1 }
 0x15c   :  { %v1428_v8 = vadd.f32 %v1771_v3, %v1388_v6 }
 0x15e   :  { %1433 = vst [vmem:[%s2399_s3] sm:$0xff] %v1428_v8  ;;  %v1434_v9 = vpack.c.bf16 %v1428_v8, %v1428_v8 }
 0x160   :  { %1435 = vst [vmem:[#allocation2] sm:$0xf] %v1434_v9 }
 0x161   :  { %1931 = shalt.err (!%p1928_p4)
}
 0x162   :  { %s1932_s7 = scalar_lea.hbm %s2400_s4, 64 }
 0x163   :  { %p1933_p5 = scmp.ne.s32.totalorder %s2400_s4, %s1932_s7  ;;  %p1936_p6 = scmp.lt.u32.totalorder %s1932_s7, %s2400_s4 }
 0x165   :  { %p1938_p7 = pnand %p1936_p6, %p1933_p5 }
 0x167   :  { %1941 = shalt.err (!%p1938_p7)
}
 0x168   :  { %1447 = dma.vmem_to_hbm [thread:$0]  %s1445_s2, 64, %s2400_s4, [#allocation3]  }
 0x169   :  { %1942 = dma.done.wait [#allocation3], 64  }
 0x16a   :  { %1943 = vsyncadd [#allocation3], 4294967232 }
 0x16b   :  { %1453 = vsyncpa [#allocation3], 1 }

</bundles_post_ra>
